<compile_context>
chip_gen: v7x
topology: tpu7x:2x2x1
jax: 0.10.0
libtpu: 0.0.40
codegen_flags: <defaults>
</compile_context>

<pallas_src>
import functools
import math

import jax
import jax.numpy as jnp
from jax import lax
from jax.experimental import pallas as pl
from jax.experimental.pallas import tpu as pltpu


_SQRT1_2 = 1.0 / math.sqrt(2.0)

CFG = dict(
    img_size=32,
    patch=16,
    in_chans=3,
    embed_dim=32,
    depth=2,
    num_heads=4,
    mlp_ratio=4,
    bottleneck_dim=64,
    width=64,
    sfda_feat_width=32,
)


# ----------------------------------------------------------------------------
# Fused whole-network kernel: grid = (B,), depth unrolled in-kernel
# ----------------------------------------------------------------------------

def _vit_sfda_kernel(
    # per-image input + embedding constants
    patches_ref, pw_ref, add_ref,
    # depth-stacked transformer block weights (leading axis L)
    ln1g_ref, ln1b_ref, qkvw_ref, qkvb_ref, projw_ref, projb_ref,
    ln2g_ref, ln2b_ref, fc1w_ref, fc1b_ref, fc2w_ref, fc2b_ref,
    # final norm + (BN-folded) SFDA head
    ng_ref, nb_ref, botw_ref, botb_ref, clsw_ref, clsb_ref, sfw_ref, sfb_ref,
    # output (1, S) for this image
    out_ref,
    *, D, NH, L, ln_eps=1e-6):
    DH = D // NH

    def layer_norm(v, g, b):
        mu = jnp.mean(v, axis=-1, keepdims=True)
        var = jnp.mean((v - mu) * (v - mu), axis=-1, keepdims=True)
        return (v - mu) * lax.rsqrt(var + ln_eps) * g + b

    # --- patch embedding + CLS token + positional embedding ----------------
    # add_ref row 0 holds (cls + pos[0]) (the matching patches row is zero);
    # rows 1.. hold (patch_bias + pos[t]).
    x = jnp.dot(patches_ref[...], pw_ref[...],
                preferred_element_type=jnp.float32) + add_ref[...]   # (T, D)

    # --- transformer blocks, statically unrolled over depth ----------------
    for d in range(L):
        h1 = layer_norm(x, ln1g_ref[d], ln1b_ref[d])
        # attention scale is pre-folded into the Q columns of qkv_w / qkv_b
        qkv = jnp.dot(h1, qkvw_ref[d],
                      preferred_element_type=jnp.float32) + qkvb_ref[d]

        heads = []
        for h in range(NH):                       # heads as lane slices
            lo = h * DH
            qh = qkv[:, lo:lo + DH]
            kh = qkv[:, D + lo:D + lo + DH]
            vh = qkv[:, 2 * D + lo:2 * D + lo + DH]
            s = lax.dot_general(qh, kh, (((1,), (1,)), ((), ())),
                                preferred_element_type=jnp.float32)   # (T, T)
            s = s - jnp.max(s, axis=-1, keepdims=True)
            ps = jnp.exp(s)
            ps = ps * pl.reciprocal(jnp.sum(ps, axis=-1, keepdims=True),
                                    approx=True)
            heads.append(jnp.dot(ps, vh,
                                 preferred_element_type=jnp.float32))  # (T,DH)
        # lane-concat the heads -> ONE full-D output-projection matmul
        attn = jnp.concatenate(heads, axis=-1)                        # (T, D)
        x = x + jnp.dot(attn, projw_ref[d],
                        preferred_element_type=jnp.float32) + projb_ref[d]

        h2 = layer_norm(x, ln2g_ref[d], ln2b_ref[d])
        mid = jnp.dot(h2, fc1w_ref[d],
                      preferred_element_type=jnp.float32) + fc1b_ref[d]
        mid = 0.5 * mid * (1.0 + lax.erf(mid * _SQRT1_2))   # exact (erf) GELU
        x = x + jnp.dot(mid, fc2w_ref[d],
                        preferred_element_type=jnp.float32) + fc2b_ref[d]

    # --- CLS (row 0) -> final LN -> (BN-folded) SFDA head -------------------
    cls_tok = x[0:1, :]                                               # (1, D)
    f = layer_norm(cls_tok, ng_ref[...], nb_ref[...])
    # bottleneck Linear (+folded BN) -> ReLU      [Dropout = identity]
    f = jnp.maximum(jnp.dot(f, botw_ref[...],
                            preferred_element_type=jnp.float32)
                    + botb_ref[...], 0.0)
    # classifier Linear -> ReLU                   [Dropout = identity]
    f = jnp.maximum(jnp.dot(f, clsw_ref[...],
                            preferred_element_type=jnp.float32)
                    + clsb_ref[...], 0.0)
    # sfda_bottleneck Linear (+folded sfda_bn)
    f = jnp.dot(f, sfw_ref[...],
                preferred_element_type=jnp.float32) + sfb_ref[...]
    out_ref[...] = f.astype(out_ref.dtype)


# ----------------------------------------------------------------------------
# Parameters
# ----------------------------------------------------------------------------

def init_params(key, cfg):
    D = cfg["embed_dim"]
    P = cfg["patch"]
    C = cfg["in_chans"]
    N = (cfg["img_size"] // P) ** 2
    T = N + 1
    H = cfg["mlp_ratio"] * D
    L = cfg["depth"]
    BD, W_, S = cfg["bottleneck_dim"], cfg["width"], cfg["sfda_feat_width"]

    def nrm(k, shape, std):
        return (std * jax.random.normal(k, shape)).astype(jnp.float32)

    ks = iter(jax.random.split(key, 32))
    p = {}
    # patch embedding (Conv2d k=s=P) stored as (C*P*P, D) matmul weight
    p["patch_w"] = nrm(next(ks), (C * P * P, D), 0.02)
    p["patch_b"] = jnp.zeros((1, D), jnp.float32)
    p["cls_token"] = nrm(next(ks), (1, D), 0.02)
    p["pos_embed"] = nrm(next(ks), (T, D), 0.02)

    # transformer blocks, stacked along a leading depth axis
    p["ln1_g"] = jnp.ones((L, 1, D), jnp.float32)
    p["ln1_b"] = jnp.zeros((L, 1, D), jnp.float32)
    p["qkv_w"] = nrm(next(ks), (L, D, 3 * D), 0.02)
    p["qkv_b"] = jnp.zeros((L, 1, 3 * D), jnp.float32)
    p["proj_w"] = nrm(next(ks), (L, D, D), 0.02)
    p["proj_b"] = jnp.zeros((L, 1, D), jnp.float32)
    p["ln2_g"] = jnp.ones((L, 1, D), jnp.float32)
    p["ln2_b"] = jnp.zeros((L, 1, D), jnp.float32)
    p["fc1_w"] = nrm(next(ks), (L, D, H), 0.02)
    p["fc1_b"] = jnp.zeros((L, 1, H), jnp.float32)
    p["fc2_w"] = nrm(next(ks), (L, H, D), 0.02)
    p["fc2_b"] = jnp.zeros((L, 1, D), jnp.float32)
    p["norm_g"] = jnp.ones((1, D), jnp.float32)
    p["norm_b"] = jnp.zeros((1, D), jnp.float32)

    # bottleneck[0]: normal(0, 0.005), bias 0.1; BN default init
    p["bot_w"] = nrm(next(ks), (D, BD), 0.005)
    p["bot_b"] = jnp.full((1, BD), 0.1, jnp.float32)
    p["bot_bn_g"] = jnp.ones((1, BD), jnp.float32)
    p["bot_bn_b"] = jnp.zeros((1, BD), jnp.float32)
    p["bot_bn_m"] = jnp.zeros((1, BD), jnp.float32)
    p["bot_bn_v"] = jnp.ones((1, BD), jnp.float32)
    # classifier[0]: normal(0, 0.01), bias 0
    p["cls_w"] = nrm(next(ks), (BD, W_), 0.01)
    p["cls_b"] = jnp.zeros((1, W_), jnp.float32)
    # sfda_bottleneck: xavier_normal, bias 0; sfda_bn default init
    xav = math.sqrt(2.0 / (W_ + S))
    p["sfda_w"] = nrm(next(ks), (W_, S), xav)
    p["sfda_b"] = jnp.zeros((1, S), jnp.float32)
    p["sfda_bn_g"] = jnp.ones((1, S), jnp.float32)
    p["sfda_bn_b"] = jnp.zeros((1, S), jnp.float32)
    p["sfda_bn_m"] = jnp.zeros((1, S), jnp.float32)
    p["sfda_bn_v"] = jnp.ones((1, S), jnp.float32)
    return p


def _fold_bn(w, b, g, beta, m, v, eps=1e-5):
    """Fold eval-mode BatchNorm1d into the preceding Linear (w:(Din,C))."""
    scale = g / jnp.sqrt(v + eps)
    return w * scale, (b - m) * scale + beta


def prepare_params(p, cfg):
    """One-time inference prep: fold BN into linears, fold the attention
    scale into the Q columns of qkv, precompute the per-token additive
    embedding term (cls+pos / patch_b+pos)."""
    D = cfg["embed_dim"]
    NH = cfg["num_heads"]
    scale = (D // NH) ** -0.5

    bot_w, bot_b = _fold_bn(p["bot_w"], p["bot_b"], p["bot_bn_g"],
                            p["bot_bn_b"], p["bot_bn_m"], p["bot_bn_v"])
    sfda_w, sfda_b = _fold_bn(p["sfda_w"], p["sfda_b"], p["sfda_bn_g"],
                              p["sfda_bn_b"], p["sfda_bn_m"], p["sfda_bn_v"])

    # q = (x @ Wq + bq) * scale  ==  x @ (Wq*scale) + bq*scale
    qkv_w = p["qkv_w"].at[:, :, :D].multiply(scale)
    qkv_b = p["qkv_b"].at[:, :, :D].multiply(scale)

    token_add = jnp.concatenate(
        [p["cls_token"] + p["pos_embed"][0:1],
         p["patch_b"] + p["pos_embed"][1:]], axis=0)          # (T, D)

    keep = ["patch_w", "ln1_g", "ln1_b", "proj_w", "proj_b",
            "ln2_g", "ln2_b", "fc1_w", "fc1_b", "fc2_w", "fc2_b",
            "norm_g", "norm_b", "cls_w", "cls_b"]
    q = {k: p[k] for k in keep}
    q.update(token_add=token_add, qkv_w=qkv_w, qkv_b=qkv_b,
             bot_w=bot_w, bot_b=bot_b, sfda_w=sfda_w, sfda_b=sfda_b)
    return q


# ----------------------------------------------------------------------------
# Forward: tiny layout glue + ONE pallas_call (grid over batch, "parallel")
# ----------------------------------------------------------------------------

def forward(params, x, cfg=CFG):
    B, C, Hi, Wi = x.shape
    P = cfg["patch"]
    D = cfg["embed_dim"]
    NH = cfg["num_heads"]
    L = cfg["depth"]
    Hdim = cfg["mlp_ratio"] * D
    Hp, Wp = Hi // P, Wi // P
    N = Hp * Wp
    T = N + 1
    CPP = C * P * P
    BD, Wd, S = cfg["bottleneck_dim"], cfg["width"], cfg["sfda_feat_width"]

    # --- glue: patchify (layout only) --------------------------------------
    # TODO(synk): at real image sizes replace this XLA transpose with a
    #             BlockSpec index_map that DMAs each (C,P,P) patch directly.
    patches = (x.reshape(B, C, Hp, P, Wp, P)
                 .transpose(0, 2, 4, 1, 3, 5)
                 .reshape(B, N, CPP).astype(jnp.float32))
    # zero row at the CLS position; the CLS/pos/patch-bias terms live in add
    aug = jnp.concatenate(
        [jnp.zeros((B, 1, CPP), jnp.float32), patches], axis=1)   # (B, T, CPP)

    def whole2(r, c):       # constant 2-D input, whole array resident in VMEM
        return pl.BlockSpec((r, c), lambda b: (0, 0))

    def whole3(l, r, c):    # depth-stacked weights, whole stack resident
        return pl.BlockSpec((l, r, c), lambda b: (0, 0, 0))

    in_specs = [
        pl.BlockSpec((None, T, CPP), lambda b: (b, 0, 0)),   # per-image patches
        whole2(CPP, D), whole2(T, D),
        whole3(L, 1, D), whole3(L, 1, D),
        whole3(L, D, 3 * D), whole3(L, 1, 3 * D),
        whole3(L, D, D), whole3(L, 1, D),
        whole3(L, 1, D), whole3(L, 1, D),
        whole3(L, D, Hdim), whole3(L, 1, Hdim),
        whole3(L, Hdim, D), whole3(L, 1, D),
        whole2(1, D), whole2(1, D),
        whole2(D, BD), whole2(1, BD), whole2(BD, Wd), whole2(1, Wd),
        whole2(Wd, S), whole2(1, S),
    ]

    kern = functools.partial(_vit_sfda_kernel, D=D, NH=NH, L=L)
    out = pl.pallas_call(
        kern,
        out_shape=jax.ShapeDtypeStruct((B, 1, S), jnp.float32),
        grid_spec=pltpu.PrefetchScalarGridSpec(
            num_scalar_prefetch=0,
            grid=(B,),
            in_specs=in_specs,
            out_specs=pl.BlockSpec((None, 1, S), lambda b: (b, 0, 0)),
        ),
        compiler_params=pltpu.CompilerParams(
            dimension_semantics=("parallel",),        # megacore split on v7x
            vmem_limit_bytes=32 * 1024 * 1024),
    )(
        aug, params["patch_w"], params["token_add"],
        params["ln1_g"], params["ln1_b"], params["qkv_w"], params["qkv_b"],
        params["proj_w"], params["proj_b"], params["ln2_g"], params["ln2_b"],
        params["fc1_w"], params["fc1_b"], params["fc2_w"], params["fc2_b"],
        params["norm_g"], params["norm_b"],
        params["bot_w"], params["bot_b"], params["cls_w"], params["cls_b"],
        params["sfda_w"], params["sfda_b"],
    )
    return out.reshape(B, S)


if __name__ == "__main__":
    key = jax.random.PRNGKey(0)
    pkey, xkey = jax.random.split(key)
    params = prepare_params(init_params(pkey, CFG), CFG)
    x = jax.random.normal(
        xkey, (2, CFG["in_chans"], CFG["img_size"], CFG["img_size"]),
        jnp.float32)

    out = jax.jit(forward)(params, x)
    out = jax.block_until_ready(out)

    assert out.shape == (2, CFG["sfda_feat_width"]), out.shape
    assert bool(jnp.all(jnp.isfinite(out)))
    print("KERNEL_OK")
</pallas_src>

<mosaic_0001>
module attributes {stable_mosaic.version = 11 : i64} {
  func.func @_vit_sfda_kernel(%arg0: i32, %arg1: memref<1x5x768xf32, #tpu.memory_space<vmem>>, %arg2: memref<768x32xf32, #tpu.memory_space<vmem>>, %arg3: memref<5x32xf32, #tpu.memory_space<vmem>>, %arg4: memref<2x1x32xf32, #tpu.memory_space<vmem>>, %arg5: memref<2x1x32xf32, #tpu.memory_space<vmem>>, %arg6: memref<2x32x96xf32, #tpu.memory_space<vmem>>, %arg7: memref<2x1x96xf32, #tpu.memory_space<vmem>>, %arg8: memref<2x32x32xf32, #tpu.memory_space<vmem>>, %arg9: memref<2x1x32xf32, #tpu.memory_space<vmem>>, %arg10: memref<2x1x32xf32, #tpu.memory_space<vmem>>, %arg11: memref<2x1x32xf32, #tpu.memory_space<vmem>>, %arg12: memref<2x32x128xf32, #tpu.memory_space<vmem>>, %arg13: memref<2x1x128xf32, #tpu.memory_space<vmem>>, %arg14: memref<2x128x32xf32, #tpu.memory_space<vmem>>, %arg15: memref<2x1x32xf32, #tpu.memory_space<vmem>>, %arg16: memref<1x32xf32, #tpu.memory_space<vmem>>, %arg17: memref<1x32xf32, #tpu.memory_space<vmem>>, %arg18: memref<32x64xf32, #tpu.memory_space<vmem>>, %arg19: memref<1x64xf32, #tpu.memory_space<vmem>>, %arg20: memref<64x64xf32, #tpu.memory_space<vmem>>, %arg21: memref<1x64xf32, #tpu.memory_space<vmem>>, %arg22: memref<64x32xf32, #tpu.memory_space<vmem>>, %arg23: memref<1x32xf32, #tpu.memory_space<vmem>>, %arg24: memref<1x1x32xf32, #tpu.memory_space<vmem>>) attributes {dimension_semantics = [#tpu.dimension_semantics<parallel>], iteration_bounds = array<i64: 2>, scalar_prefetch = 0 : i64, scratch_operands = 0 : i64, tpu.core_type = #tpu.core_type<tc>, window_params = [{transform_indices = @transform_0, window_bounds = array<i64: 1, 5, 768>}, {pipeline_mode = #tpu.pipeline_mode<synchronous>, transform_indices = @transform_1, window_bounds = array<i64: 768, 32>}, {pipeline_mode = #tpu.pipeline_mode<synchronous>, transform_indices = @transform_2, window_bounds = array<i64: 5, 32>}, {pipeline_mode = #tpu.pipeline_mode<synchronous>, transform_indices = @transform_3, window_bounds = array<i64: 2, 1, 32>}, {pipeline_mode = #tpu.pipeline_mode<synchronous>, transform_indices = @transform_4, window_bounds = array<i64: 2, 1, 32>}, {pipeline_mode = #tpu.pipeline_mode<synchronous>, transform_indices = @transform_5, window_bounds = array<i64: 2, 32, 96>}, {pipeline_mode = #tpu.pipeline_mode<synchronous>, transform_indices = @transform_6, window_bounds = array<i64: 2, 1, 96>}, {pipeline_mode = #tpu.pipeline_mode<synchronous>, transform_indices = @transform_7, window_bounds = array<i64: 2, 32, 32>}, {pipeline_mode = #tpu.pipeline_mode<synchronous>, transform_indices = @transform_8, window_bounds = array<i64: 2, 1, 32>}, {pipeline_mode = #tpu.pipeline_mode<synchronous>, transform_indices = @transform_9, window_bounds = array<i64: 2, 1, 32>}, {pipeline_mode = #tpu.pipeline_mode<synchronous>, transform_indices = @transform_10, window_bounds = array<i64: 2, 1, 32>}, {pipeline_mode = #tpu.pipeline_mode<synchronous>, transform_indices = @transform_11, window_bounds = array<i64: 2, 32, 128>}, {pipeline_mode = #tpu.pipeline_mode<synchronous>, transform_indices = @transform_12, window_bounds = array<i64: 2, 1, 128>}, {pipeline_mode = #tpu.pipeline_mode<synchronous>, transform_indices = @transform_13, window_bounds = array<i64: 2, 128, 32>}, {pipeline_mode = #tpu.pipeline_mode<synchronous>, transform_indices = @transform_14, window_bounds = array<i64: 2, 1, 32>}, {pipeline_mode = #tpu.pipeline_mode<synchronous>, transform_indices = @transform_15, window_bounds = array<i64: 1, 32>}, {pipeline_mode = #tpu.pipeline_mode<synchronous>, transform_indices = @transform_16, window_bounds = array<i64: 1, 32>}, {pipeline_mode = #tpu.pipeline_mode<synchronous>, transform_indices = @transform_17, window_bounds = array<i64: 32, 64>}, {pipeline_mode = #tpu.pipeline_mode<synchronous>, transform_indices = @transform_18, window_bounds = array<i64: 1, 64>}, {pipeline_mode = #tpu.pipeline_mode<synchronous>, transform_indices = @transform_19, window_bounds = array<i64: 64, 64>}, {pipeline_mode = #tpu.pipeline_mode<synchronous>, transform_indices = @transform_20, window_bounds = array<i64: 1, 64>}, {pipeline_mode = #tpu.pipeline_mode<synchronous>, transform_indices = @transform_21, window_bounds = array<i64: 64, 32>}, {pipeline_mode = #tpu.pipeline_mode<synchronous>, transform_indices = @transform_22, window_bounds = array<i64: 1, 32>}, {transform_indices = @transform_23, window_bounds = array<i64: 1, 1, 32>}]} {
    %c0 = arith.constant 0 : index
    %c0_0 = arith.constant 0 : index
    %c0_1 = arith.constant 0 : index
    %0 = vector.load %arg1[%c0, %c0_0, %c0_1] : memref<1x5x768xf32, #tpu.memory_space<vmem>>, vector<1x5x768xf32>
    %1 = vector.shape_cast %0 : vector<1x5x768xf32> to vector<5x768xf32>
    %c0_2 = arith.constant 0 : index
    %c0_3 = arith.constant 0 : index
    %2 = vector.load %arg2[%c0_2, %c0_3] : memref<768x32xf32, #tpu.memory_space<vmem>>, vector<768x32xf32>
    %cst = arith.constant dense<0.000000e+00> : vector<5x32xf32>
    %3 = tpu.matmul %1, %2, %cst {dimension_numbers = #tpu.dot_dimension_numbers<[1], [0], [0], [1], [0, 0, 1, 1], [], []>} : vector<5x768xf32>, vector<768x32xf32>, vector<5x32xf32> -> vector<5x32xf32>
    %c0_4 = arith.constant 0 : index
    %c0_5 = arith.constant 0 : index
    %4 = vector.load %arg3[%c0_4, %c0_5] : memref<5x32xf32, #tpu.memory_space<vmem>>, vector<5x32xf32>
    %5 = arith.addf %3, %4 : vector<5x32xf32>
    %c0_6 = arith.constant 0 : index
    %c0_7 = arith.constant 0 : index
    %c0_8 = arith.constant 0 : index
    %6 = vector.load %arg4[%c0_6, %c0_7, %c0_8] : memref<2x1x32xf32, #tpu.memory_space<vmem>>, vector<1x1x32xf32>
    %7 = vector.shape_cast %6 : vector<1x1x32xf32> to vector<1x32xf32>
    %c0_9 = arith.constant 0 : index
    %c0_10 = arith.constant 0 : index
    %c0_11 = arith.constant 0 : index
    %8 = vector.load %arg5[%c0_9, %c0_10, %c0_11] : memref<2x1x32xf32, #tpu.memory_space<vmem>>, vector<1x1x32xf32>
    %9 = vector.shape_cast %8 : vector<1x1x32xf32> to vector<1x32xf32>
    %cst_12 = arith.constant dense<0.000000e+00> : vector<5xf32>
    %10 = vector.multi_reduction <add>, %5, %cst_12 [1] : vector<5x32xf32> to vector<5xf32>
    %11 = vector.shape_cast %10 : vector<5xf32> to vector<5x1xf32>
    %cst_13 = arith.constant 3.200000e+01 : f32
    %12 = vector.broadcast %cst_13 : f32 to vector<5x1xf32>
    %13 = arith.divf %11, %12 : vector<5x1xf32>
    %14 = vector.broadcast %13 : vector<5x1xf32> to vector<5x32xf32>
    %15 = arith.subf %5, %14 : vector<5x32xf32>
    %16 = vector.broadcast %13 : vector<5x1xf32> to vector<5x32xf32>
    %17 = arith.subf %5, %16 : vector<5x32xf32>
    %18 = arith.mulf %15, %17 : vector<5x32xf32>
    %cst_14 = arith.constant dense<0.000000e+00> : vector<5xf32>
    %19 = vector.multi_reduction <add>, %18, %cst_14 [1] : vector<5x32xf32> to vector<5xf32>
    %20 = vector.shape_cast %19 : vector<5xf32> to vector<5x1xf32>
    %cst_15 = arith.constant 3.200000e+01 : f32
    %21 = vector.broadcast %cst_15 : f32 to vector<5x1xf32>
    %22 = arith.divf %20, %21 : vector<5x1xf32>
    %23 = vector.broadcast %13 : vector<5x1xf32> to vector<5x32xf32>
    %24 = arith.subf %5, %23 : vector<5x32xf32>
    %cst_16 = arith.constant 9.99999997E-7 : f32
    %25 = vector.broadcast %cst_16 : f32 to vector<5x1xf32>
    %26 = arith.addf %22, %25 : vector<5x1xf32>
    %27 = math.rsqrt %26 : vector<5x1xf32>
    %28 = vector.broadcast %27 : vector<5x1xf32> to vector<5x32xf32>
    %29 = arith.mulf %24, %28 : vector<5x32xf32>
    %30 = vector.broadcast %7 : vector<1x32xf32> to vector<5x32xf32>
    %31 = arith.mulf %29, %30 : vector<5x32xf32>
    %32 = vector.broadcast %9 : vector<1x32xf32> to vector<5x32xf32>
    %33 = arith.addf %31, %32 : vector<5x32xf32>
    %c0_17 = arith.constant 0 : index
    %c0_18 = arith.constant 0 : index
    %c0_19 = arith.constant 0 : index
    %34 = vector.load %arg6[%c0_17, %c0_18, %c0_19] : memref<2x32x96xf32, #tpu.memory_space<vmem>>, vector<1x32x96xf32>
    %35 = vector.shape_cast %34 : vector<1x32x96xf32> to vector<32x96xf32>
    %cst_20 = arith.constant dense<0.000000e+00> : vector<5x96xf32>
    %36 = tpu.matmul %33, %35, %cst_20 {dimension_numbers = #tpu.dot_dimension_numbers<[1], [0], [0], [1], [0, 0, 1, 1], [], []>} : vector<5x32xf32>, vector<32x96xf32>, vector<5x96xf32> -> vector<5x96xf32>
    %c0_21 = arith.constant 0 : index
    %c0_22 = arith.constant 0 : index
    %c0_23 = arith.constant 0 : index
    %37 = vector.load %arg7[%c0_21, %c0_22, %c0_23] : memref<2x1x96xf32, #tpu.memory_space<vmem>>, vector<1x1x96xf32>
    %38 = vector.shape_cast %37 : vector<1x1x96xf32> to vector<1x96xf32>
    %39 = vector.broadcast %38 : vector<1x96xf32> to vector<5x96xf32>
    %40 = arith.addf %36, %39 : vector<5x96xf32>
    %41 = vector.extract_strided_slice %40 {offsets = [0, 0], sizes = [5, 8], strides = [1, 1]} : vector<5x96xf32> to vector<5x8xf32>
    %42 = vector.extract_strided_slice %40 {offsets = [0, 32], sizes = [5, 8], strides = [1, 1]} : vector<5x96xf32> to vector<5x8xf32>
    %43 = vector.extract_strided_slice %40 {offsets = [0, 64], sizes = [5, 8], strides = [1, 1]} : vector<5x96xf32> to vector<5x8xf32>
    %cst_24 = arith.constant dense<0.000000e+00> : vector<5x5xf32>
    %44 = tpu.matmul %41, %42, %cst_24 {dimension_numbers = #tpu.dot_dimension_numbers<[1], [1], [0], [0], [0, 0, 1, 0], [], []>} : vector<5x8xf32>, vector<5x8xf32>, vector<5x5xf32> -> vector<5x5xf32>
    %cst_25 = arith.constant dense<0xFF800000> : vector<5xf32>
    %45 = vector.multi_reduction <maximumf>, %44, %cst_25 [1] : vector<5x5xf32> to vector<5xf32>
    %46 = vector.shape_cast %45 : vector<5xf32> to vector<5x1xf32>
    %47 = vector.broadcast %46 : vector<5x1xf32> to vector<5x5xf32>
    %48 = arith.subf %44, %47 : vector<5x5xf32>
    %49 = math.exp %48 : vector<5x5xf32>
    %cst_26 = arith.constant dense<0.000000e+00> : vector<5xf32>
    %50 = vector.multi_reduction <add>, %49, %cst_26 [1] : vector<5x5xf32> to vector<5xf32>
    %51 = vector.shape_cast %50 : vector<5xf32> to vector<5x1xf32>
    %52 = tpu.reciprocal %51 {approx = true} : vector<5x1xf32> -> vector<5x1xf32>
    %53 = vector.broadcast %52 : vector<5x1xf32> to vector<5x5xf32>
    %54 = arith.mulf %49, %53 : vector<5x5xf32>
    %cst_27 = arith.constant dense<0.000000e+00> : vector<5x8xf32>
    %55 = tpu.matmul %54, %43, %cst_27 {dimension_numbers = #tpu.dot_dimension_numbers<[1], [0], [0], [1], [0, 0, 1, 1], [], []>} : vector<5x5xf32>, vector<5x8xf32>, vector<5x8xf32> -> vector<5x8xf32>
    %56 = vector.extract_strided_slice %40 {offsets = [0, 8], sizes = [5, 8], strides = [1, 1]} : vector<5x96xf32> to vector<5x8xf32>
    %57 = vector.extract_strided_slice %40 {offsets = [0, 40], sizes = [5, 8], strides = [1, 1]} : vector<5x96xf32> to vector<5x8xf32>
    %58 = vector.extract_strided_slice %40 {offsets = [0, 72], sizes = [5, 8], strides = [1, 1]} : vector<5x96xf32> to vector<5x8xf32>
    %cst_28 = arith.constant dense<0.000000e+00> : vector<5x5xf32>
    %59 = tpu.matmul %56, %57, %cst_28 {dimension_numbers = #tpu.dot_dimension_numbers<[1], [1], [0], [0], [0, 0, 1, 0], [], []>} : vector<5x8xf32>, vector<5x8xf32>, vector<5x5xf32> -> vector<5x5xf32>
    %cst_29 = arith.constant dense<0xFF800000> : vector<5xf32>
    %60 = vector.multi_reduction <maximumf>, %59, %cst_29 [1] : vector<5x5xf32> to vector<5xf32>
    %61 = vector.shape_cast %60 : vector<5xf32> to vector<5x1xf32>
    %62 = vector.broadcast %61 : vector<5x1xf32> to vector<5x5xf32>
    %63 = arith.subf %59, %62 : vector<5x5xf32>
    %64 = math.exp %63 : vector<5x5xf32>
    %cst_30 = arith.constant dense<0.000000e+00> : vector<5xf32>
    %65 = vector.multi_reduction <add>, %64, %cst_30 [1] : vector<5x5xf32> to vector<5xf32>
    %66 = vector.shape_cast %65 : vector<5xf32> to vector<5x1xf32>
    %67 = tpu.reciprocal %66 {approx = true} : vector<5x1xf32> -> vector<5x1xf32>
    %68 = vector.broadcast %67 : vector<5x1xf32> to vector<5x5xf32>
    %69 = arith.mulf %64, %68 : vector<5x5xf32>
    %cst_31 = arith.constant dense<0.000000e+00> : vector<5x8xf32>
    %70 = tpu.matmul %69, %58, %cst_31 {dimension_numbers = #tpu.dot_dimension_numbers<[1], [0], [0], [1], [0, 0, 1, 1], [], []>} : vector<5x5xf32>, vector<5x8xf32>, vector<5x8xf32> -> vector<5x8xf32>
    %71 = vector.extract_strided_slice %40 {offsets = [0, 16], sizes = [5, 8], strides = [1, 1]} : vector<5x96xf32> to vector<5x8xf32>
    %72 = vector.extract_strided_slice %40 {offsets = [0, 48], sizes = [5, 8], strides = [1, 1]} : vector<5x96xf32> to vector<5x8xf32>
    %73 = vector.extract_strided_slice %40 {offsets = [0, 80], sizes = [5, 8], strides = [1, 1]} : vector<5x96xf32> to vector<5x8xf32>
    %cst_32 = arith.constant dense<0.000000e+00> : vector<5x5xf32>
    %74 = tpu.matmul %71, %72, %cst_32 {dimension_numbers = #tpu.dot_dimension_numbers<[1], [1], [0], [0], [0, 0, 1, 0], [], []>} : vector<5x8xf32>, vector<5x8xf32>, vector<5x5xf32> -> vector<5x5xf32>
    %cst_33 = arith.constant dense<0xFF800000> : vector<5xf32>
    %75 = vector.multi_reduction <maximumf>, %74, %cst_33 [1] : vector<5x5xf32> to vector<5xf32>
    %76 = vector.shape_cast %75 : vector<5xf32> to vector<5x1xf32>
    %77 = vector.broadcast %76 : vector<5x1xf32> to vector<5x5xf32>
    %78 = arith.subf %74, %77 : vector<5x5xf32>
    %79 = math.exp %78 : vector<5x5xf32>
    %cst_34 = arith.constant dense<0.000000e+00> : vector<5xf32>
    %80 = vector.multi_reduction <add>, %79, %cst_34 [1] : vector<5x5xf32> to vector<5xf32>
    %81 = vector.shape_cast %80 : vector<5xf32> to vector<5x1xf32>
    %82 = tpu.reciprocal %81 {approx = true} : vector<5x1xf32> -> vector<5x1xf32>
    %83 = vector.broadcast %82 : vector<5x1xf32> to vector<5x5xf32>
    %84 = arith.mulf %79, %83 : vector<5x5xf32>
    %cst_35 = arith.constant dense<0.000000e+00> : vector<5x8xf32>
    %85 = tpu.matmul %84, %73, %cst_35 {dimension_numbers = #tpu.dot_dimension_numbers<[1], [0], [0], [1], [0, 0, 1, 1], [], []>} : vector<5x5xf32>, vector<5x8xf32>, vector<5x8xf32> -> vector<5x8xf32>
    %86 = vector.extract_strided_slice %40 {offsets = [0, 24], sizes = [5, 8], strides = [1, 1]} : vector<5x96xf32> to vector<5x8xf32>
    %87 = vector.extract_strided_slice %40 {offsets = [0, 56], sizes = [5, 8], strides = [1, 1]} : vector<5x96xf32> to vector<5x8xf32>
    %88 = vector.extract_strided_slice %40 {offsets = [0, 88], sizes = [5, 8], strides = [1, 1]} : vector<5x96xf32> to vector<5x8xf32>
    %cst_36 = arith.constant dense<0.000000e+00> : vector<5x5xf32>
    %89 = tpu.matmul %86, %87, %cst_36 {dimension_numbers = #tpu.dot_dimension_numbers<[1], [1], [0], [0], [0, 0, 1, 0], [], []>} : vector<5x8xf32>, vector<5x8xf32>, vector<5x5xf32> -> vector<5x5xf32>
    %cst_37 = arith.constant dense<0xFF800000> : vector<5xf32>
    %90 = vector.multi_reduction <maximumf>, %89, %cst_37 [1] : vector<5x5xf32> to vector<5xf32>
    %91 = vector.shape_cast %90 : vector<5xf32> to vector<5x1xf32>
    %92 = vector.broadcast %91 : vector<5x1xf32> to vector<5x5xf32>
    %93 = arith.subf %89, %92 : vector<5x5xf32>
    %94 = math.exp %93 : vector<5x5xf32>
    %cst_38 = arith.constant dense<0.000000e+00> : vector<5xf32>
    %95 = vector.multi_reduction <add>, %94, %cst_38 [1] : vector<5x5xf32> to vector<5xf32>
    %96 = vector.shape_cast %95 : vector<5xf32> to vector<5x1xf32>
    %97 = tpu.reciprocal %96 {approx = true} : vector<5x1xf32> -> vector<5x1xf32>
    %98 = vector.broadcast %97 : vector<5x1xf32> to vector<5x5xf32>
    %99 = arith.mulf %94, %98 : vector<5x5xf32>
    %cst_39 = arith.constant dense<0.000000e+00> : vector<5x8xf32>
    %100 = tpu.matmul %99, %88, %cst_39 {dimension_numbers = #tpu.dot_dimension_numbers<[1], [0], [0], [1], [0, 0, 1, 1], [], []>} : vector<5x5xf32>, vector<5x8xf32>, vector<5x8xf32> -> vector<5x8xf32>
    %101 = tpu.concatenate %55, %70, %85, %100 in 1 : vector<5x8xf32>, vector<5x8xf32>, vector<5x8xf32>, vector<5x8xf32> -> vector<5x32xf32>
    %c0_40 = arith.constant 0 : index
    %c0_41 = arith.constant 0 : index
    %c0_42 = arith.constant 0 : index
    %102 = vector.load %arg8[%c0_40, %c0_41, %c0_42] : memref<2x32x32xf32, #tpu.memory_space<vmem>>, vector<1x32x32xf32>
    %103 = vector.shape_cast %102 : vector<1x32x32xf32> to vector<32x32xf32>
    %cst_43 = arith.constant dense<0.000000e+00> : vector<5x32xf32>
    %104 = tpu.matmul %101, %103, %cst_43 {dimension_numbers = #tpu.dot_dimension_numbers<[1], [0], [0], [1], [0, 0, 1, 1], [], []>} : vector<5x32xf32>, vector<32x32xf32>, vector<5x32xf32> -> vector<5x32xf32>
    %105 = arith.addf %5, %104 : vector<5x32xf32>
    %c0_44 = arith.constant 0 : index
    %c0_45 = arith.constant 0 : index
    %c0_46 = arith.constant 0 : index
    %106 = vector.load %arg9[%c0_44, %c0_45, %c0_46] : memref<2x1x32xf32, #tpu.memory_space<vmem>>, vector<1x1x32xf32>
    %107 = vector.shape_cast %106 : vector<1x1x32xf32> to vector<1x32xf32>
    %108 = vector.broadcast %107 : vector<1x32xf32> to vector<5x32xf32>
    %109 = arith.addf %105, %108 : vector<5x32xf32>
    %c0_47 = arith.constant 0 : index
    %c0_48 = arith.constant 0 : index
    %c0_49 = arith.constant 0 : index
    %110 = vector.load %arg10[%c0_47, %c0_48, %c0_49] : memref<2x1x32xf32, #tpu.memory_space<vmem>>, vector<1x1x32xf32>
    %111 = vector.shape_cast %110 : vector<1x1x32xf32> to vector<1x32xf32>
    %c0_50 = arith.constant 0 : index
    %c0_51 = arith.constant 0 : index
    %c0_52 = arith.constant 0 : index
    %112 = vector.load %arg11[%c0_50, %c0_51, %c0_52] : memref<2x1x32xf32, #tpu.memory_space<vmem>>, vector<1x1x32xf32>
    %113 = vector.shape_cast %112 : vector<1x1x32xf32> to vector<1x32xf32>
    %cst_53 = arith.constant dense<0.000000e+00> : vector<5xf32>
    %114 = vector.multi_reduction <add>, %109, %cst_53 [1] : vector<5x32xf32> to vector<5xf32>
    %115 = vector.shape_cast %114 : vector<5xf32> to vector<5x1xf32>
    %cst_54 = arith.constant 3.200000e+01 : f32
    %116 = vector.broadcast %cst_54 : f32 to vector<5x1xf32>
    %117 = arith.divf %115, %116 : vector<5x1xf32>
    %118 = vector.broadcast %117 : vector<5x1xf32> to vector<5x32xf32>
    %119 = arith.subf %109, %118 : vector<5x32xf32>
    %120 = vector.broadcast %117 : vector<5x1xf32> to vector<5x32xf32>
    %121 = arith.subf %109, %120 : vector<5x32xf32>
    %122 = arith.mulf %119, %121 : vector<5x32xf32>
    %cst_55 = arith.constant dense<0.000000e+00> : vector<5xf32>
    %123 = vector.multi_reduction <add>, %122, %cst_55 [1] : vector<5x32xf32> to vector<5xf32>
    %124 = vector.shape_cast %123 : vector<5xf32> to vector<5x1xf32>
    %cst_56 = arith.constant 3.200000e+01 : f32
    %125 = vector.broadcast %cst_56 : f32 to vector<5x1xf32>
    %126 = arith.divf %124, %125 : vector<5x1xf32>
    %127 = vector.broadcast %117 : vector<5x1xf32> to vector<5x32xf32>
    %128 = arith.subf %109, %127 : vector<5x32xf32>
    %cst_57 = arith.constant 9.99999997E-7 : f32
    %129 = vector.broadcast %cst_57 : f32 to vector<5x1xf32>
    %130 = arith.addf %126, %129 : vector<5x1xf32>
    %131 = math.rsqrt %130 : vector<5x1xf32>
    %132 = vector.broadcast %131 : vector<5x1xf32> to vector<5x32xf32>
    %133 = arith.mulf %128, %132 : vector<5x32xf32>
    %134 = vector.broadcast %111 : vector<1x32xf32> to vector<5x32xf32>
    %135 = arith.mulf %133, %134 : vector<5x32xf32>
    %136 = vector.broadcast %113 : vector<1x32xf32> to vector<5x32xf32>
    %137 = arith.addf %135, %136 : vector<5x32xf32>
    %c0_58 = arith.constant 0 : index
    %c0_59 = arith.constant 0 : index
    %c0_60 = arith.constant 0 : index
    %138 = vector.load %arg12[%c0_58, %c0_59, %c0_60] : memref<2x32x128xf32, #tpu.memory_space<vmem>>, vector<1x32x128xf32>
    %139 = vector.shape_cast %138 : vector<1x32x128xf32> to vector<32x128xf32>
    %cst_61 = arith.constant dense<0.000000e+00> : vector<5x128xf32>
    %140 = tpu.matmul %137, %139, %cst_61 {dimension_numbers = #tpu.dot_dimension_numbers<[1], [0], [0], [1], [0, 0, 1, 1], [], []>} : vector<5x32xf32>, vector<32x128xf32>, vector<5x128xf32> -> vector<5x128xf32>
    %c0_62 = arith.constant 0 : index
    %c0_63 = arith.constant 0 : index
    %c0_64 = arith.constant 0 : index
    %141 = vector.load %arg13[%c0_62, %c0_63, %c0_64] : memref<2x1x128xf32, #tpu.memory_space<vmem>>, vector<1x1x128xf32>
    %142 = vector.shape_cast %141 : vector<1x1x128xf32> to vector<1x128xf32>
    %143 = vector.broadcast %142 : vector<1x128xf32> to vector<5x128xf32>
    %144 = arith.addf %140, %143 : vector<5x128xf32>
    %cst_65 = arith.constant 5.000000e-01 : f32
    %145 = vector.broadcast %cst_65 : f32 to vector<5x128xf32>
    %146 = arith.mulf %145, %144 : vector<5x128xf32>
    %cst_66 = arith.constant 0.707106769 : f32
    %147 = vector.broadcast %cst_66 : f32 to vector<5x128xf32>
    %148 = arith.mulf %144, %147 : vector<5x128xf32>
    %149 = math.erf %148 : vector<5x128xf32>
    %cst_67 = arith.constant 1.000000e+00 : f32
    %150 = vector.broadcast %cst_67 : f32 to vector<5x128xf32>
    %151 = arith.addf %150, %149 : vector<5x128xf32>
    %152 = arith.mulf %146, %151 : vector<5x128xf32>
    %c0_68 = arith.constant 0 : index
    %c0_69 = arith.constant 0 : index
    %c0_70 = arith.constant 0 : index
    %153 = vector.load %arg14[%c0_68, %c0_69, %c0_70] : memref<2x128x32xf32, #tpu.memory_space<vmem>>, vector<1x128x32xf32>
    %154 = vector.shape_cast %153 : vector<1x128x32xf32> to vector<128x32xf32>
    %cst_71 = arith.constant dense<0.000000e+00> : vector<5x32xf32>
    %155 = tpu.matmul %152, %154, %cst_71 {dimension_numbers = #tpu.dot_dimension_numbers<[1], [0], [0], [1], [0, 0, 1, 1], [], []>} : vector<5x128xf32>, vector<128x32xf32>, vector<5x32xf32> -> vector<5x32xf32>
    %156 = arith.addf %109, %155 : vector<5x32xf32>
    %c0_72 = arith.constant 0 : index
    %c0_73 = arith.constant 0 : index
    %c0_74 = arith.constant 0 : index
    %157 = vector.load %arg15[%c0_72, %c0_73, %c0_74] : memref<2x1x32xf32, #tpu.memory_space<vmem>>, vector<1x1x32xf32>
    %158 = vector.shape_cast %157 : vector<1x1x32xf32> to vector<1x32xf32>
    %159 = vector.broadcast %158 : vector<1x32xf32> to vector<5x32xf32>
    %160 = arith.addf %156, %159 : vector<5x32xf32>
    %c1 = arith.constant 1 : index
    %c0_75 = arith.constant 0 : index
    %c0_76 = arith.constant 0 : index
    %161 = vector.load %arg4[%c1, %c0_75, %c0_76] : memref<2x1x32xf32, #tpu.memory_space<vmem>>, vector<1x1x32xf32>
    %162 = vector.shape_cast %161 : vector<1x1x32xf32> to vector<1x32xf32>
    %c1_77 = arith.constant 1 : index
    %c0_78 = arith.constant 0 : index
    %c0_79 = arith.constant 0 : index
    %163 = vector.load %arg5[%c1_77, %c0_78, %c0_79] : memref<2x1x32xf32, #tpu.memory_space<vmem>>, vector<1x1x32xf32>
    %164 = vector.shape_cast %163 : vector<1x1x32xf32> to vector<1x32xf32>
    %cst_80 = arith.constant dense<0.000000e+00> : vector<5xf32>
    %165 = vector.multi_reduction <add>, %160, %cst_80 [1] : vector<5x32xf32> to vector<5xf32>
    %166 = vector.shape_cast %165 : vector<5xf32> to vector<5x1xf32>
    %cst_81 = arith.constant 3.200000e+01 : f32
    %167 = vector.broadcast %cst_81 : f32 to vector<5x1xf32>
    %168 = arith.divf %166, %167 : vector<5x1xf32>
    %169 = vector.broadcast %168 : vector<5x1xf32> to vector<5x32xf32>
    %170 = arith.subf %160, %169 : vector<5x32xf32>
    %171 = vector.broadcast %168 : vector<5x1xf32> to vector<5x32xf32>
    %172 = arith.subf %160, %171 : vector<5x32xf32>
    %173 = arith.mulf %170, %172 : vector<5x32xf32>
    %cst_82 = arith.constant dense<0.000000e+00> : vector<5xf32>
    %174 = vector.multi_reduction <add>, %173, %cst_82 [1] : vector<5x32xf32> to vector<5xf32>
    %175 = vector.shape_cast %174 : vector<5xf32> to vector<5x1xf32>
    %cst_83 = arith.constant 3.200000e+01 : f32
    %176 = vector.broadcast %cst_83 : f32 to vector<5x1xf32>
    %177 = arith.divf %175, %176 : vector<5x1xf32>
    %178 = vector.broadcast %168 : vector<5x1xf32> to vector<5x32xf32>
    %179 = arith.subf %160, %178 : vector<5x32xf32>
    %cst_84 = arith.constant 9.99999997E-7 : f32
    %180 = vector.broadcast %cst_84 : f32 to vector<5x1xf32>
    %181 = arith.addf %177, %180 : vector<5x1xf32>
    %182 = math.rsqrt %181 : vector<5x1xf32>
    %183 = vector.broadcast %182 : vector<5x1xf32> to vector<5x32xf32>
    %184 = arith.mulf %179, %183 : vector<5x32xf32>
    %185 = vector.broadcast %162 : vector<1x32xf32> to vector<5x32xf32>
    %186 = arith.mulf %184, %185 : vector<5x32xf32>
    %187 = vector.broadcast %164 : vector<1x32xf32> to vector<5x32xf32>
    %188 = arith.addf %186, %187 : vector<5x32xf32>
    %c1_85 = arith.constant 1 : index
    %c0_86 = arith.constant 0 : index
    %c0_87 = arith.constant 0 : index
    %189 = vector.load %arg6[%c1_85, %c0_86, %c0_87] : memref<2x32x96xf32, #tpu.memory_space<vmem>>, vector<1x32x96xf32>
    %190 = vector.shape_cast %189 : vector<1x32x96xf32> to vector<32x96xf32>
    %cst_88 = arith.constant dense<0.000000e+00> : vector<5x96xf32>
    %191 = tpu.matmul %188, %190, %cst_88 {dimension_numbers = #tpu.dot_dimension_numbers<[1], [0], [0], [1], [0, 0, 1, 1], [], []>} : vector<5x32xf32>, vector<32x96xf32>, vector<5x96xf32> -> vector<5x96xf32>
    %c1_89 = arith.constant 1 : index
    %c0_90 = arith.constant 0 : index
    %c0_91 = arith.constant 0 : index
    %192 = vector.load %arg7[%c1_89, %c0_90, %c0_91] : memref<2x1x96xf32, #tpu.memory_space<vmem>>, vector<1x1x96xf32>
    %193 = vector.shape_cast %192 : vector<1x1x96xf32> to vector<1x96xf32>
    %194 = vector.broadcast %193 : vector<1x96xf32> to vector<5x96xf32>
    %195 = arith.addf %191, %194 : vector<5x96xf32>
    %196 = vector.extract_strided_slice %195 {offsets = [0, 0], sizes = [5, 8], strides = [1, 1]} : vector<5x96xf32> to vector<5x8xf32>
    %197 = vector.extract_strided_slice %195 {offsets = [0, 32], sizes = [5, 8], strides = [1, 1]} : vector<5x96xf32> to vector<5x8xf32>
    %198 = vector.extract_strided_slice %195 {offsets = [0, 64], sizes = [5, 8], strides = [1, 1]} : vector<5x96xf32> to vector<5x8xf32>
    %cst_92 = arith.constant dense<0.000000e+00> : vector<5x5xf32>
    %199 = tpu.matmul %196, %197, %cst_92 {dimension_numbers = #tpu.dot_dimension_numbers<[1], [1], [0], [0], [0, 0, 1, 0], [], []>} : vector<5x8xf32>, vector<5x8xf32>, vector<5x5xf32> -> vector<5x5xf32>
    %cst_93 = arith.constant dense<0xFF800000> : vector<5xf32>
    %200 = vector.multi_reduction <maximumf>, %199, %cst_93 [1] : vector<5x5xf32> to vector<5xf32>
    %201 = vector.shape_cast %200 : vector<5xf32> to vector<5x1xf32>
    %202 = vector.broadcast %201 : vector<5x1xf32> to vector<5x5xf32>
    %203 = arith.subf %199, %202 : vector<5x5xf32>
    %204 = math.exp %203 : vector<5x5xf32>
    %cst_94 = arith.constant dense<0.000000e+00> : vector<5xf32>
    %205 = vector.multi_reduction <add>, %204, %cst_94 [1] : vector<5x5xf32> to vector<5xf32>
    %206 = vector.shape_cast %205 : vector<5xf32> to vector<5x1xf32>
    %207 = tpu.reciprocal %206 {approx = true} : vector<5x1xf32> -> vector<5x1xf32>
    %208 = vector.broadcast %207 : vector<5x1xf32> to vector<5x5xf32>
    %209 = arith.mulf %204, %208 : vector<5x5xf32>
    %cst_95 = arith.constant dense<0.000000e+00> : vector<5x8xf32>
    %210 = tpu.matmul %209, %198, %cst_95 {dimension_numbers = #tpu.dot_dimension_numbers<[1], [0], [0], [1], [0, 0, 1, 1], [], []>} : vector<5x5xf32>, vector<5x8xf32>, vector<5x8xf32> -> vector<5x8xf32>
    %211 = vector.extract_strided_slice %195 {offsets = [0, 8], sizes = [5, 8], strides = [1, 1]} : vector<5x96xf32> to vector<5x8xf32>
    %212 = vector.extract_strided_slice %195 {offsets = [0, 40], sizes = [5, 8], strides = [1, 1]} : vector<5x96xf32> to vector<5x8xf32>
    %213 = vector.extract_strided_slice %195 {offsets = [0, 72], sizes = [5, 8], strides = [1, 1]} : vector<5x96xf32> to vector<5x8xf32>
    %cst_96 = arith.constant dense<0.000000e+00> : vector<5x5xf32>
    %214 = tpu.matmul %211, %212, %cst_96 {dimension_numbers = #tpu.dot_dimension_numbers<[1], [1], [0], [0], [0, 0, 1, 0], [], []>} : vector<5x8xf32>, vector<5x8xf32>, vector<5x5xf32> -> vector<5x5xf32>
    %cst_97 = arith.constant dense<0xFF800000> : vector<5xf32>
    %215 = vector.multi_reduction <maximumf>, %214, %cst_97 [1] : vector<5x5xf32> to vector<5xf32>
    %216 = vector.shape_cast %215 : vector<5xf32> to vector<5x1xf32>
    %217 = vector.broadcast %216 : vector<5x1xf32> to vector<5x5xf32>
    %218 = arith.subf %214, %217 : vector<5x5xf32>
    %219 = math.exp %218 : vector<5x5xf32>
    %cst_98 = arith.constant dense<0.000000e+00> : vector<5xf32>
    %220 = vector.multi_reduction <add>, %219, %cst_98 [1] : vector<5x5xf32> to vector<5xf32>
    %221 = vector.shape_cast %220 : vector<5xf32> to vector<5x1xf32>
    %222 = tpu.reciprocal %221 {approx = true} : vector<5x1xf32> -> vector<5x1xf32>
    %223 = vector.broadcast %222 : vector<5x1xf32> to vector<5x5xf32>
    %224 = arith.mulf %219, %223 : vector<5x5xf32>
    %cst_99 = arith.constant dense<0.000000e+00> : vector<5x8xf32>
    %225 = tpu.matmul %224, %213, %cst_99 {dimension_numbers = #tpu.dot_dimension_numbers<[1], [0], [0], [1], [0, 0, 1, 1], [], []>} : vector<5x5xf32>, vector<5x8xf32>, vector<5x8xf32> -> vector<5x8xf32>
    %226 = vector.extract_strided_slice %195 {offsets = [0, 16], sizes = [5, 8], strides = [1, 1]} : vector<5x96xf32> to vector<5x8xf32>
    %227 = vector.extract_strided_slice %195 {offsets = [0, 48], sizes = [5, 8], strides = [1, 1]} : vector<5x96xf32> to vector<5x8xf32>
    %228 = vector.extract_strided_slice %195 {offsets = [0, 80], sizes = [5, 8], strides = [1, 1]} : vector<5x96xf32> to vector<5x8xf32>
    %cst_100 = arith.constant dense<0.000000e+00> : vector<5x5xf32>
    %229 = tpu.matmul %226, %227, %cst_100 {dimension_numbers = #tpu.dot_dimension_numbers<[1], [1], [0], [0], [0, 0, 1, 0], [], []>} : vector<5x8xf32>, vector<5x8xf32>, vector<5x5xf32> -> vector<5x5xf32>
    %cst_101 = arith.constant dense<0xFF800000> : vector<5xf32>
    %230 = vector.multi_reduction <maximumf>, %229, %cst_101 [1] : vector<5x5xf32> to vector<5xf32>
    %231 = vector.shape_cast %230 : vector<5xf32> to vector<5x1xf32>
    %232 = vector.broadcast %231 : vector<5x1xf32> to vector<5x5xf32>
    %233 = arith.subf %229, %232 : vector<5x5xf32>
    %234 = math.exp %233 : vector<5x5xf32>
    %cst_102 = arith.constant dense<0.000000e+00> : vector<5xf32>
    %235 = vector.multi_reduction <add>, %234, %cst_102 [1] : vector<5x5xf32> to vector<5xf32>
    %236 = vector.shape_cast %235 : vector<5xf32> to vector<5x1xf32>
    %237 = tpu.reciprocal %236 {approx = true} : vector<5x1xf32> -> vector<5x1xf32>
    %238 = vector.broadcast %237 : vector<5x1xf32> to vector<5x5xf32>
    %239 = arith.mulf %234, %238 : vector<5x5xf32>
    %cst_103 = arith.constant dense<0.000000e+00> : vector<5x8xf32>
    %240 = tpu.matmul %239, %228, %cst_103 {dimension_numbers = #tpu.dot_dimension_numbers<[1], [0], [0], [1], [0, 0, 1, 1], [], []>} : vector<5x5xf32>, vector<5x8xf32>, vector<5x8xf32> -> vector<5x8xf32>
    %241 = vector.extract_strided_slice %195 {offsets = [0, 24], sizes = [5, 8], strides = [1, 1]} : vector<5x96xf32> to vector<5x8xf32>
    %242 = vector.extract_strided_slice %195 {offsets = [0, 56], sizes = [5, 8], strides = [1, 1]} : vector<5x96xf32> to vector<5x8xf32>
    %243 = vector.extract_strided_slice %195 {offsets = [0, 88], sizes = [5, 8], strides = [1, 1]} : vector<5x96xf32> to vector<5x8xf32>
    %cst_104 = arith.constant dense<0.000000e+00> : vector<5x5xf32>
    %244 = tpu.matmul %241, %242, %cst_104 {dimension_numbers = #tpu.dot_dimension_numbers<[1], [1], [0], [0], [0, 0, 1, 0], [], []>} : vector<5x8xf32>, vector<5x8xf32>, vector<5x5xf32> -> vector<5x5xf32>
    %cst_105 = arith.constant dense<0xFF800000> : vector<5xf32>
    %245 = vector.multi_reduction <maximumf>, %244, %cst_105 [1] : vector<5x5xf32> to vector<5xf32>
    %246 = vector.shape_cast %245 : vector<5xf32> to vector<5x1xf32>
    %247 = vector.broadcast %246 : vector<5x1xf32> to vector<5x5xf32>
    %248 = arith.subf %244, %247 : vector<5x5xf32>
    %249 = math.exp %248 : vector<5x5xf32>
    %cst_106 = arith.constant dense<0.000000e+00> : vector<5xf32>
    %250 = vector.multi_reduction <add>, %249, %cst_106 [1] : vector<5x5xf32> to vector<5xf32>
    %251 = vector.shape_cast %250 : vector<5xf32> to vector<5x1xf32>
    %252 = tpu.reciprocal %251 {approx = true} : vector<5x1xf32> -> vector<5x1xf32>
    %253 = vector.broadcast %252 : vector<5x1xf32> to vector<5x5xf32>
    %254 = arith.mulf %249, %253 : vector<5x5xf32>
    %cst_107 = arith.constant dense<0.000000e+00> : vector<5x8xf32>
    %255 = tpu.matmul %254, %243, %cst_107 {dimension_numbers = #tpu.dot_dimension_numbers<[1], [0], [0], [1], [0, 0, 1, 1], [], []>} : vector<5x5xf32>, vector<5x8xf32>, vector<5x8xf32> -> vector<5x8xf32>
    %256 = tpu.concatenate %210, %225, %240, %255 in 1 : vector<5x8xf32>, vector<5x8xf32>, vector<5x8xf32>, vector<5x8xf32> -> vector<5x32xf32>
    %c1_108 = arith.constant 1 : index
    %c0_109 = arith.constant 0 : index
    %c0_110 = arith.constant 0 : index
    %257 = vector.load %arg8[%c1_108, %c0_109, %c0_110] : memref<2x32x32xf32, #tpu.memory_space<vmem>>, vector<1x32x32xf32>
    %258 = vector.shape_cast %257 : vector<1x32x32xf32> to vector<32x32xf32>
    %cst_111 = arith.constant dense<0.000000e+00> : vector<5x32xf32>
    %259 = tpu.matmul %256, %258, %cst_111 {dimension_numbers = #tpu.dot_dimension_numbers<[1], [0], [0], [1], [0, 0, 1, 1], [], []>} : vector<5x32xf32>, vector<32x32xf32>, vector<5x32xf32> -> vector<5x32xf32>
    %260 = arith.addf %160, %259 : vector<5x32xf32>
    %c1_112 = arith.constant 1 : index
    %c0_113 = arith.constant 0 : index
    %c0_114 = arith.constant 0 : index
    %261 = vector.load %arg9[%c1_112, %c0_113, %c0_114] : memref<2x1x32xf32, #tpu.memory_space<vmem>>, vector<1x1x32xf32>
    %262 = vector.shape_cast %261 : vector<1x1x32xf32> to vector<1x32xf32>
    %263 = vector.broadcast %262 : vector<1x32xf32> to vector<5x32xf32>
    %264 = arith.addf %260, %263 : vector<5x32xf32>
    %c1_115 = arith.constant 1 : index
    %c0_116 = arith.constant 0 : index
    %c0_117 = arith.constant 0 : index
    %265 = vector.load %arg10[%c1_115, %c0_116, %c0_117] : memref<2x1x32xf32, #tpu.memory_space<vmem>>, vector<1x1x32xf32>
    %266 = vector.shape_cast %265 : vector<1x1x32xf32> to vector<1x32xf32>
    %c1_118 = arith.constant 1 : index
    %c0_119 = arith.constant 0 : index
    %c0_120 = arith.constant 0 : index
    %267 = vector.load %arg11[%c1_118, %c0_119, %c0_120] : memref<2x1x32xf32, #tpu.memory_space<vmem>>, vector<1x1x32xf32>
    %268 = vector.shape_cast %267 : vector<1x1x32xf32> to vector<1x32xf32>
    %cst_121 = arith.constant dense<0.000000e+00> : vector<5xf32>
    %269 = vector.multi_reduction <add>, %264, %cst_121 [1] : vector<5x32xf32> to vector<5xf32>
    %270 = vector.shape_cast %269 : vector<5xf32> to vector<5x1xf32>
    %cst_122 = arith.constant 3.200000e+01 : f32
    %271 = vector.broadcast %cst_122 : f32 to vector<5x1xf32>
    %272 = arith.divf %270, %271 : vector<5x1xf32>
    %273 = vector.broadcast %272 : vector<5x1xf32> to vector<5x32xf32>
    %274 = arith.subf %264, %273 : vector<5x32xf32>
    %275 = vector.broadcast %272 : vector<5x1xf32> to vector<5x32xf32>
    %276 = arith.subf %264, %275 : vector<5x32xf32>
    %277 = arith.mulf %274, %276 : vector<5x32xf32>
    %cst_123 = arith.constant dense<0.000000e+00> : vector<5xf32>
    %278 = vector.multi_reduction <add>, %277, %cst_123 [1] : vector<5x32xf32> to vector<5xf32>
    %279 = vector.shape_cast %278 : vector<5xf32> to vector<5x1xf32>
    %cst_124 = arith.constant 3.200000e+01 : f32
    %280 = vector.broadcast %cst_124 : f32 to vector<5x1xf32>
    %281 = arith.divf %279, %280 : vector<5x1xf32>
    %282 = vector.broadcast %272 : vector<5x1xf32> to vector<5x32xf32>
    %283 = arith.subf %264, %282 : vector<5x32xf32>
    %cst_125 = arith.constant 9.99999997E-7 : f32
    %284 = vector.broadcast %cst_125 : f32 to vector<5x1xf32>
    %285 = arith.addf %281, %284 : vector<5x1xf32>
    %286 = math.rsqrt %285 : vector<5x1xf32>
    %287 = vector.broadcast %286 : vector<5x1xf32> to vector<5x32xf32>
    %288 = arith.mulf %283, %287 : vector<5x32xf32>
    %289 = vector.broadcast %266 : vector<1x32xf32> to vector<5x32xf32>
    %290 = arith.mulf %288, %289 : vector<5x32xf32>
    %291 = vector.broadcast %268 : vector<1x32xf32> to vector<5x32xf32>
    %292 = arith.addf %290, %291 : vector<5x32xf32>
    %c1_126 = arith.constant 1 : index
    %c0_127 = arith.constant 0 : index
    %c0_128 = arith.constant 0 : index
    %293 = vector.load %arg12[%c1_126, %c0_127, %c0_128] : memref<2x32x128xf32, #tpu.memory_space<vmem>>, vector<1x32x128xf32>
    %294 = vector.shape_cast %293 : vector<1x32x128xf32> to vector<32x128xf32>
    %cst_129 = arith.constant dense<0.000000e+00> : vector<5x128xf32>
    %295 = tpu.matmul %292, %294, %cst_129 {dimension_numbers = #tpu.dot_dimension_numbers<[1], [0], [0], [1], [0, 0, 1, 1], [], []>} : vector<5x32xf32>, vector<32x128xf32>, vector<5x128xf32> -> vector<5x128xf32>
    %c1_130 = arith.constant 1 : index
    %c0_131 = arith.constant 0 : index
    %c0_132 = arith.constant 0 : index
    %296 = vector.load %arg13[%c1_130, %c0_131, %c0_132] : memref<2x1x128xf32, #tpu.memory_space<vmem>>, vector<1x1x128xf32>
    %297 = vector.shape_cast %296 : vector<1x1x128xf32> to vector<1x128xf32>
    %298 = vector.broadcast %297 : vector<1x128xf32> to vector<5x128xf32>
    %299 = arith.addf %295, %298 : vector<5x128xf32>
    %cst_133 = arith.constant 5.000000e-01 : f32
    %300 = vector.broadcast %cst_133 : f32 to vector<5x128xf32>
    %301 = arith.mulf %300, %299 : vector<5x128xf32>
    %cst_134 = arith.constant 0.707106769 : f32
    %302 = vector.broadcast %cst_134 : f32 to vector<5x128xf32>
    %303 = arith.mulf %299, %302 : vector<5x128xf32>
    %304 = math.erf %303 : vector<5x128xf32>
    %cst_135 = arith.constant 1.000000e+00 : f32
    %305 = vector.broadcast %cst_135 : f32 to vector<5x128xf32>
    %306 = arith.addf %305, %304 : vector<5x128xf32>
    %307 = arith.mulf %301, %306 : vector<5x128xf32>
    %c1_136 = arith.constant 1 : index
    %c0_137 = arith.constant 0 : index
    %c0_138 = arith.constant 0 : index
    %308 = vector.load %arg14[%c1_136, %c0_137, %c0_138] : memref<2x128x32xf32, #tpu.memory_space<vmem>>, vector<1x128x32xf32>
    %309 = vector.shape_cast %308 : vector<1x128x32xf32> to vector<128x32xf32>
    %cst_139 = arith.constant dense<0.000000e+00> : vector<5x32xf32>
    %310 = tpu.matmul %307, %309, %cst_139 {dimension_numbers = #tpu.dot_dimension_numbers<[1], [0], [0], [1], [0, 0, 1, 1], [], []>} : vector<5x128xf32>, vector<128x32xf32>, vector<5x32xf32> -> vector<5x32xf32>
    %311 = arith.addf %264, %310 : vector<5x32xf32>
    %c1_140 = arith.constant 1 : index
    %c0_141 = arith.constant 0 : index
    %c0_142 = arith.constant 0 : index
    %312 = vector.load %arg15[%c1_140, %c0_141, %c0_142] : memref<2x1x32xf32, #tpu.memory_space<vmem>>, vector<1x1x32xf32>
    %313 = vector.shape_cast %312 : vector<1x1x32xf32> to vector<1x32xf32>
    %314 = vector.broadcast %313 : vector<1x32xf32> to vector<5x32xf32>
    %315 = arith.addf %311, %314 : vector<5x32xf32>
    %316 = vector.extract_strided_slice %315 {offsets = [0, 0], sizes = [1, 32], strides = [1, 1]} : vector<5x32xf32> to vector<1x32xf32>
    %c0_143 = arith.constant 0 : index
    %c0_144 = arith.constant 0 : index
    %317 = vector.load %arg16[%c0_143, %c0_144] : memref<1x32xf32, #tpu.memory_space<vmem>>, vector<1x32xf32>
    %c0_145 = arith.constant 0 : index
    %c0_146 = arith.constant 0 : index
    %318 = vector.load %arg17[%c0_145, %c0_146] : memref<1x32xf32, #tpu.memory_space<vmem>>, vector<1x32xf32>
    %cst_147 = arith.constant dense<0.000000e+00> : vector<1xf32>
    %319 = vector.multi_reduction <add>, %316, %cst_147 [1] : vector<1x32xf32> to vector<1xf32>
    %320 = vector.shape_cast %319 : vector<1xf32> to vector<1x1xf32>
    %cst_148 = arith.constant 3.200000e+01 : f32
    %321 = vector.broadcast %cst_148 : f32 to vector<1x1xf32>
    %322 = arith.divf %320, %321 : vector<1x1xf32>
    %323 = vector.broadcast %322 : vector<1x1xf32> to vector<1x32xf32>
    %324 = arith.subf %316, %323 : vector<1x32xf32>
    %325 = vector.broadcast %322 : vector<1x1xf32> to vector<1x32xf32>
    %326 = arith.subf %316, %325 : vector<1x32xf32>
    %327 = arith.mulf %324, %326 : vector<1x32xf32>
    %cst_149 = arith.constant dense<0.000000e+00> : vector<1xf32>
    %328 = vector.multi_reduction <add>, %327, %cst_149 [1] : vector<1x32xf32> to vector<1xf32>
    %329 = vector.shape_cast %328 : vector<1xf32> to vector<1x1xf32>
    %cst_150 = arith.constant 3.200000e+01 : f32
    %330 = vector.broadcast %cst_150 : f32 to vector<1x1xf32>
    %331 = arith.divf %329, %330 : vector<1x1xf32>
    %332 = vector.broadcast %322 : vector<1x1xf32> to vector<1x32xf32>
    %333 = arith.subf %316, %332 : vector<1x32xf32>
    %cst_151 = arith.constant 9.99999997E-7 : f32
    %334 = vector.broadcast %cst_151 : f32 to vector<1x1xf32>
    %335 = arith.addf %331, %334 : vector<1x1xf32>
    %336 = math.rsqrt %335 : vector<1x1xf32>
    %337 = vector.broadcast %336 : vector<1x1xf32> to vector<1x32xf32>
    %338 = arith.mulf %333, %337 : vector<1x32xf32>
    %339 = arith.mulf %338, %317 : vector<1x32xf32>
    %340 = arith.addf %339, %318 : vector<1x32xf32>
    %c0_152 = arith.constant 0 : index
    %c0_153 = arith.constant 0 : index
    %341 = vector.load %arg18[%c0_152, %c0_153] : memref<32x64xf32, #tpu.memory_space<vmem>>, vector<32x64xf32>
    %cst_154 = arith.constant dense<0.000000e+00> : vector<1x64xf32>
    %342 = tpu.matmul %340, %341, %cst_154 {dimension_numbers = #tpu.dot_dimension_numbers<[1], [0], [0], [1], [0, 0, 1, 1], [], []>} : vector<1x32xf32>, vector<32x64xf32>, vector<1x64xf32> -> vector<1x64xf32>
    %c0_155 = arith.constant 0 : index
    %c0_156 = arith.constant 0 : index
    %343 = vector.load %arg19[%c0_155, %c0_156] : memref<1x64xf32, #tpu.memory_space<vmem>>, vector<1x64xf32>
    %344 = arith.addf %342, %343 : vector<1x64xf32>
    %cst_157 = arith.constant 0.000000e+00 : f32
    %345 = vector.broadcast %cst_157 : f32 to vector<1x64xf32>
    %346 = arith.maximumf %344, %345 : vector<1x64xf32>
    %c0_158 = arith.constant 0 : index
    %c0_159 = arith.constant 0 : index
    %347 = vector.load %arg20[%c0_158, %c0_159] : memref<64x64xf32, #tpu.memory_space<vmem>>, vector<64x64xf32>
    %cst_160 = arith.constant dense<0.000000e+00> : vector<1x64xf32>
    %348 = tpu.matmul %346, %347, %cst_160 {dimension_numbers = #tpu.dot_dimension_numbers<[1], [0], [0], [1], [0, 0, 1, 1], [], []>} : vector<1x64xf32>, vector<64x64xf32>, vector<1x64xf32> -> vector<1x64xf32>
    %c0_161 = arith.constant 0 : index
    %c0_162 = arith.constant 0 : index
    %349 = vector.load %arg21[%c0_161, %c0_162] : memref<1x64xf32, #tpu.memory_space<vmem>>, vector<1x64xf32>
    %350 = arith.addf %348, %349 : vector<1x64xf32>
    %cst_163 = arith.constant 0.000000e+00 : f32
    %351 = vector.broadcast %cst_163 : f32 to vector<1x64xf32>
    %352 = arith.maximumf %350, %351 : vector<1x64xf32>
    %c0_164 = arith.constant 0 : index
    %c0_165 = arith.constant 0 : index
    %353 = vector.load %arg22[%c0_164, %c0_165] : memref<64x32xf32, #tpu.memory_space<vmem>>, vector<64x32xf32>
    %cst_166 = arith.constant dense<0.000000e+00> : vector<1x32xf32>
    %354 = tpu.matmul %352, %353, %cst_166 {dimension_numbers = #tpu.dot_dimension_numbers<[1], [0], [0], [1], [0, 0, 1, 1], [], []>} : vector<1x64xf32>, vector<64x32xf32>, vector<1x32xf32> -> vector<1x32xf32>
    %c0_167 = arith.constant 0 : index
    %c0_168 = arith.constant 0 : index
    %355 = vector.load %arg23[%c0_167, %c0_168] : memref<1x32xf32, #tpu.memory_space<vmem>>, vector<1x32xf32>
    %356 = arith.addf %354, %355 : vector<1x32xf32>
    %c0_169 = arith.constant 0 : index
    %c0_170 = arith.constant 0 : index
    %c0_171 = arith.constant 0 : index
    %357 = vector.load %arg24[%c0_169, %c0_170, %c0_171] : memref<1x1x32xf32, #tpu.memory_space<vmem>>, vector<1x1x32xf32>
    %358 = vector.shape_cast %357 : vector<1x1x32xf32> to vector<1x32xf32>
    %359 = vector.shape_cast %356 : vector<1x32xf32> to vector<1x1x32xf32>
    tpu.vector_store %arg24[%c0_169, %c0_170, %c0_171], %359 {strides = array<i32>} : memref<1x1x32xf32, #tpu.memory_space<vmem>>, vector<1x1x32xf32>,
    return
  }
  func.func @transform_0(%arg0: i32) -> (i32, i32, i32) {
    %c0_i32 = arith.constant 0 : i32
    %c0_i32_0 = arith.constant 0 : i32
    %c0_i32_1 = arith.constant 0 : i32
    return %arg0, %c0_i32, %c0_i32_0 : i32, i32, i32
  }
  func.func @transform_1(%arg0: i32) -> (i32, i32) {
    %c0_i32 = arith.constant 0 : i32
    %c0_i32_0 = arith.constant 0 : i32
    %c0_i32_1 = arith.constant 0 : i32
    return %c0_i32, %c0_i32_0 : i32, i32
  }
  func.func @transform_2(%arg0: i32) -> (i32, i32) {
    %c0_i32 = arith.constant 0 : i32
    %c0_i32_0 = arith.constant 0 : i32
    %c0_i32_1 = arith.constant 0 : i32
    return %c0_i32, %c0_i32_0 : i32, i32
  }
  func.func @transform_3(%arg0: i32) -> (i32, i32, i32) {
    %c0_i32 = arith.constant 0 : i32
    %c0_i32_0 = arith.constant 0 : i32
    %c0_i32_1 = arith.constant 0 : i32
    %c0_i32_2 = arith.constant 0 : i32
    return %c0_i32, %c0_i32_0, %c0_i32_1 : i32, i32, i32
  }
  func.func @transform_4(%arg0: i32) -> (i32, i32, i32) {
    %c0_i32 = arith.constant 0 : i32
    %c0_i32_0 = arith.constant 0 : i32
    %c0_i32_1 = arith.constant 0 : i32
    %c0_i32_2 = arith.constant 0 : i32
    return %c0_i32, %c0_i32_0, %c0_i32_1 : i32, i32, i32
  }
  func.func @transform_5(%arg0: i32) -> (i32, i32, i32) {
    %c0_i32 = arith.constant 0 : i32
    %c0_i32_0 = arith.constant 0 : i32
    %c0_i32_1 = arith.constant 0 : i32
    %c0_i32_2 = arith.constant 0 : i32
    return %c0_i32, %c0_i32_0, %c0_i32_1 : i32, i32, i32
  }
  func.func @transform_6(%arg0: i32) -> (i32, i32, i32) {
    %c0_i32 = arith.constant 0 : i32
    %c0_i32_0 = arith.constant 0 : i32
    %c0_i32_1 = arith.constant 0 : i32
    %c0_i32_2 = arith.constant 0 : i32
    return %c0_i32, %c0_i32_0, %c0_i32_1 : i32, i32, i32
  }
  func.func @transform_7(%arg0: i32) -> (i32, i32, i32) {
    %c0_i32 = arith.constant 0 : i32
    %c0_i32_0 = arith.constant 0 : i32
    %c0_i32_1 = arith.constant 0 : i32
    %c0_i32_2 = arith.constant 0 : i32
    return %c0_i32, %c0_i32_0, %c0_i32_1 : i32, i32, i32
  }
  func.func @transform_8(%arg0: i32) -> (i32, i32, i32) {
    %c0_i32 = arith.constant 0 : i32
    %c0_i32_0 = arith.constant 0 : i32
    %c0_i32_1 = arith.constant 0 : i32
    %c0_i32_2 = arith.constant 0 : i32
    return %c0_i32, %c0_i32_0, %c0_i32_1 : i32, i32, i32
  }
  func.func @transform_9(%arg0: i32) -> (i32, i32, i32) {
    %c0_i32 = arith.constant 0 : i32
    %c0_i32_0 = arith.constant 0 : i32
    %c0_i32_1 = arith.constant 0 : i32
    %c0_i32_2 = arith.constant 0 : i32
    return %c0_i32, %c0_i32_0, %c0_i32_1 : i32, i32, i32
  }
  func.func @transform_10(%arg0: i32) -> (i32, i32, i32) {
    %c0_i32 = arith.constant 0 : i32
    %c0_i32_0 = arith.constant 0 : i32
    %c0_i32_1 = arith.constant 0 : i32
    %c0_i32_2 = arith.constant 0 : i32
    return %c0_i32, %c0_i32_0, %c0_i32_1 : i32, i32, i32
  }
  func.func @transform_11(%arg0: i32) -> (i32, i32, i32) {
    %c0_i32 = arith.constant 0 : i32
    %c0_i32_0 = arith.constant 0 : i32
    %c0_i32_1 = arith.constant 0 : i32
    %c0_i32_2 = arith.constant 0 : i32
    return %c0_i32, %c0_i32_0, %c0_i32_1 : i32, i32, i32
  }
  func.func @transform_12(%arg0: i32) -> (i32, i32, i32) {
    %c0_i32 = arith.constant 0 : i32
    %c0_i32_0 = arith.constant 0 : i32
    %c0_i32_1 = arith.constant 0 : i32
    %c0_i32_2 = arith.constant 0 : i32
    return %c0_i32, %c0_i32_0, %c0_i32_1 : i32, i32, i32
  }
  func.func @transform_13(%arg0: i32) -> (i32, i32, i32) {
    %c0_i32 = arith.constant 0 : i32
    %c0_i32_0 = arith.constant 0 : i32
    %c0_i32_1 = arith.constant 0 : i32
    %c0_i32_2 = arith.constant 0 : i32
    return %c0_i32, %c0_i32_0, %c0_i32_1 : i32, i32, i32
  }
  func.func @transform_14(%arg0: i32) -> (i32, i32, i32) {
    %c0_i32 = arith.constant 0 : i32
    %c0_i32_0 = arith.constant 0 : i32
    %c0_i32_1 = arith.constant 0 : i32
    %c0_i32_2 = arith.constant 0 : i32
    return %c0_i32, %c0_i32_0, %c0_i32_1 : i32, i32, i32
  }
  func.func @transform_15(%arg0: i32) -> (i32, i32) {
    %c0_i32 = arith.constant 0 : i32
    %c0_i32_0 = arith.constant 0 : i32
    %c0_i32_1 = arith.constant 0 : i32
    return %c0_i32, %c0_i32_0 : i32, i32
  }
  func.func @transform_16(%arg0: i32) -> (i32, i32) {
    %c0_i32 = arith.constant 0 : i32
    %c0_i32_0 = arith.constant 0 : i32
    %c0_i32_1 = arith.constant 0 : i32
    return %c0_i32, %c0_i32_0 : i32, i32
  }
  func.func @transform_17(%arg0: i32) -> (i32, i32) {
    %c0_i32 = arith.constant 0 : i32
    %c0_i32_0 = arith.constant 0 : i32
    %c0_i32_1 = arith.constant 0 : i32
    return %c0_i32, %c0_i32_0 : i32, i32
  }
  func.func @transform_18(%arg0: i32) -> (i32, i32) {
    %c0_i32 = arith.constant 0 : i32
    %c0_i32_0 = arith.constant 0 : i32
    %c0_i32_1 = arith.constant 0 : i32
    return %c0_i32, %c0_i32_0 : i32, i32
  }
  func.func @transform_19(%arg0: i32) -> (i32, i32) {
    %c0_i32 = arith.constant 0 : i32
    %c0_i32_0 = arith.constant 0 : i32
    %c0_i32_1 = arith.constant 0 : i32
    return %c0_i32, %c0_i32_0 : i32, i32
  }
  func.func @transform_20(%arg0: i32) -> (i32, i32) {
    %c0_i32 = arith.constant 0 : i32
    %c0_i32_0 = arith.constant 0 : i32
    %c0_i32_1 = arith.constant 0 : i32
    return %c0_i32, %c0_i32_0 : i32, i32
  }
  func.func @transform_21(%arg0: i32) -> (i32, i32) {
    %c0_i32 = arith.constant 0 : i32
    %c0_i32_0 = arith.constant 0 : i32
    %c0_i32_1 = arith.constant 0 : i32
    return %c0_i32, %c0_i32_0 : i32, i32
  }
  func.func @transform_22(%arg0: i32) -> (i32, i32) {
    %c0_i32 = arith.constant 0 : i32
    %c0_i32_0 = arith.constant 0 : i32
    %c0_i32_1 = arith.constant 0 : i32
    return %c0_i32, %c0_i32_0 : i32, i32
  }
  func.func @transform_23(%arg0: i32) -> (i32, i32, i32) {
    %c0_i32 = arith.constant 0 : i32
    %c0_i32_0 = arith.constant 0 : i32
    %c0_i32_1 = arith.constant 0 : i32
    return %arg0, %c0_i32, %c0_i32_0 : i32, i32, i32
  }
}

</mosaic_0001>

<bundles_post_ra>
// kernel: forward.1
= control target key start
LH: loop header
LB: loop body
LE: loop exit
PB: predicated region body
PF: predicated region fallthrough
CT: control target
= control target key end

     0   :  { %s5618_s0 = inlined_call_operand.vmem [shape: f32[2,5,768], index: 0, kind: input, shape index: {}]   ;;  %s5619_s1 = inlined_call_operand.vmem [shape: f32[768,32], index: 1, kind: input, shape index: {}]   ;;  %s5620_s2 = inlined_call_operand.vmem [shape: f32[5,32], index: 2, kind: input, shape index: {}]   ;;  %s5621_s3 = inlined_call_operand.vmem [shape: f32[2,1,32], index: 3, kind: input, shape index: {}]   ;;  %s5622_s4 = inlined_call_operand.vmem [shape: f32[2,1,32], index: 4, kind: input, shape index: {}]   ;;  %s5623_s5 = inlined_call_operand.vmem [shape: f32[2,32,96], index: 5, kind: input, shape index: {}]   ;;  %s5624_s6 = inlined_call_operand.vmem [shape: f32[2,1,96], index: 6, kind: input, shape index: {}]   ;;  %s5625_s7 = inlined_call_operand.vmem [shape: f32[2,32,32], index: 7, kind: input, shape index: {}]   ;;  %s5626_s8 = inlined_call_operand.vmem [shape: f32[2,1,32], index: 8, kind: input, shape index: {}]   ;;  %s5627_s9 = inlined_call_operand.vmem [shape: f32[2,1,32], index: 9, kind: input, shape index: {}]   ;;  %s5628_s10 = inlined_call_operand.vmem [shape: f32[2,1,32], index: 10, kind: input, shape index: {}]   ;;  %s5629_s11 = inlined_call_operand.vmem [shape: f32[2,32,128], index: 11, kind: input, shape index: {}]   ;;  %s5630_s12 = inlined_call_operand.vmem [shape: f32[2,1,128], index: 12, kind: input, shape index: {}]   ;;  %s5631_s13 = inlined_call_operand.vmem [shape: f32[2,128,32], index: 13, kind: input, shape index: {}]   ;;  %s5632_s14 = inlined_call_operand.vmem [shape: f32[2,1,32], index: 14, kind: input, shape index: {}]   ;;  %s5633_s15 = inlined_call_operand.vmem [shape: f32[1,32], index: 15, kind: input, shape index: {}]   ;;  %s5634_s16 = inlined_call_operand.vmem [shape: f32[1,32], index: 16, kind: input, shape index: {}]   ;;  %s5635_s17 = inlined_call_operand.vmem [shape: f32[32,64], index: 17, kind: input, shape index: {}]   ;;  %s5636_s18 = inlined_call_operand.vmem [shape: f32[1,64], index: 18, kind: input, shape index: {}]   ;;  %s5637_s19 = inlined_call_operand.vmem [shape: f32[64,64], index: 19, kind: input, shape index: {}]   ;;  %s5638_s20 = inlined_call_operand.vmem [shape: f32[1,64], index: 20, kind: input, shape index: {}]   ;;  %s5639_s21 = inlined_call_operand.vmem [shape: f32[64,32], index: 21, kind: input, shape index: {}]   ;;  %s5640_s22 = inlined_call_operand.vmem [shape: f32[1,32], index: 22, kind: input, shape index: {}]   ;;  %s5641_s23 = inlined_call_operand.hbm [shape: f32[2,1,32], index: 23, kind: output, shape index: {}]  }
   0x1   :  { %5672 = sst [smem:[#allocation11_spill]] %s5618_s0 }
   0x2   :  { %5673 = sst [smem:[#allocation12_spill]] %s5619_s1 }
   0x3   :  { %5674 = sst [smem:[#allocation13_spill]] %s5620_s2 }
   0x4   :  { %5675 = sst [smem:[#allocation14_spill]] %s5621_s3 }
   0x5   :  { %5676 = sst [smem:[#allocation15_spill]] %s5622_s4 }
   0x6   :  { %5677 = sst [smem:[#allocation16_spill]] %s5623_s5 }
   0x7   :  { %5678 = sst [smem:[#allocation17_spill]] %s5624_s6 }
   0x8   :  { %5679 = sst [smem:[#allocation18_spill]] %s5625_s7 }
   0x9   :  { %5680 = sst [smem:[#allocation19_spill]] %s5626_s8 }
   0xa   :  { %5681 = sst [smem:[#allocation20_spill]] %s5640_s22 }
   0xb   :  { %5682 = sst [smem:[#allocation21_spill]] %s5641_s23 }
   0xc   :  { %28 = vsyncpa [#allocation3], 0 }
   0xd   :  { %30 = vsyncpa [#allocation3 + $0x1], 0  ;;  %s4659_s4 = smov 0   ;;  %s4661_s30 = smov 0  }
   0xe   :  { %s4663_s24 = smov 0   ;;  %s4665_s25 = smov 0  }
   0xf LB: > { %5683 = sst [smem:[#allocation5_spill]] %s4507_s4  ;;  %s4680_s5 = sadd.s32 4294967295, %s4519_s25   ;;  %s4519_s25 = sphi %s4665_s25, %s5721_s25   ;;  %s4515_s24 = sphi %s4663_s24, %s5723_s24   ;;  %s4511_s30 = sphi %s4661_s30, %s5725_s30   ;;  %s4507_s4 = sphi %s4659_s4, %s5724_s4  }
  0x10   : > { %5684 = sst [smem:[#allocation6_spill]] %s4515_s24  ;;  %s3554_s1 = sadd.s32 4294967294, %s4519_s25  }
  0x11   : > { %5685 = sst [smem:[#allocation7_spill]] %s4519_s25  ;;  %s4684_s26 = sadd.s32 1, %s4519_s25  }
  0x12   : > { %5686 = sst [smem:[#allocation8_spill]] %s4684_s26  ;;  %s531_s2 = sadd.s32 1, %s4515_s24 }
  0x13   : > { %s528_s6 = ssub.s32 %s4519_s25, %s4684_s26  ;;  %p541_p0 = scmp.ne.s32.totalorder %s4515_s24, %s4511_s30 }
  0x14   : > { %p529_p1 = scmp.eq.s32.totalorder %s528_s6, 0  ;;  %p542_p2 = scmp.eq.s32.totalorder %s4680_s5, 1 }
  0x15   : > { %p547_p3 = scmp.ne.s32.totalorder %s4511_s30, %s4507_s4  ;;  %p548_p4 = scmp.eq.s32.totalorder %s3554_s1, 1 }
  0x16   : > { %s4695_s27 = scalar_select %p529_p1, %s4515_s24, %s531_s2  }
  0x17   : > { %p4697_p5 = por %p542_p2, %p541_p0  ;;  %p4701_p6 = por %p548_p4, %p547_p3 }
  0x18   : > { %5687 = sst [smem:[#allocation9_spill]] %s4695_s27  ;;  %p3557_p7 = scmp.ge.s32.totalorder %s4519_s25, 1 }
  0x19   : > { %s5689_s28 = scalar_select %p4701_p6, 1, 0 }
  0x1a   : > { %p640_p8 = scmp.lt.s32.totalorder %s4519_s25, 3 }
  0x1b   : > { %5690 = sst [smem:[#allocation10_spill]] %s5689_s28 }
  0x1c   : > { %p641_p9 = pnand %p3557_p7, %p640_p8 }
  0x1d   : > { %s5691_s0 = sld [smem:[#allocation12_spill]] (!%p641_p9)  ;;  %p703_p10 = scmp.lt.s32.totalorder (!%p641_p9), %s4680_s5, 1  ;;  %vm1023_vm0 = vcmask (!%p641_p9), 258048   ;;  %vm4522_vm1 = vmmov (!%p641_p9), 0   ;;  %vm1063_vm2 = vcmask (!%p641_p9), 261120   ;;  %vm1140_vm3 = vcmask (!%p641_p9), 64512  }
  0x1e   : > { %644 = sbr.rel (%p641_p9) target bundleno = 8370 (0x20b2), region = 112  ;;  %s5692_s29 = sld [smem:[#allocation11_spill]] (!%p641_p9)  ;;  %vm1233_vm4 = vcmask (!%p641_p9), 1044480   ;;  %vm1215_vm5 = vcmask (!%p641_p9), 36864   ;;  %vm1229_vm6 = vcmask (!%p641_p9), 39936   ;;  %vm1817_vm7 = vcmask (!%p641_p9), 130048  }
  0x1f   : > { %s5693_s1 = sld [smem:[#allocation13_spill]] (!%p641_p9)  ;;  %s5694_s4 = sld [smem:[#allocation16_spill]] (!%p641_p9)  ;;  %vm1819_vm8 = vcmask (!%p641_p9), 195584   ;;  %vm3224_vm9 = vcmask (!%p641_p9), 253952   ;;  %vm3328_vm10 = vcmask (!%p641_p9), 523264  }
  0x20   : > { %s5699_s2 = sld [smem:[#allocation17_spill]] (!%p641_p9)  ;;  %s5665_s23 = smov (!%p641_p9), 88  }
  0x21   : > { %s5664_s6 = smov (!%p641_p9), 120   ;;  %s5662_s26 = smov (!%p641_p9), 80  }
  0x22   : > { %s5655_s25 = smov (!%p641_p9), 72   ;;  %s5660_s22 = smov (!%p641_p9), 104  }
  0x23   : > { %v730_v0 = vld [vmem:[%s5691_s0 + $0x80] sm:$0xff] (!%p641_p9)  ;;  %v731_v1 = vld [vmem:[%s5691_s0 + $0x88] sm:$0xff] (!%p641_p9)  ;;  %v732_v11 = vld [vmem:[%s5691_s0 + $0x90] sm:$0xff] (!%p641_p9)  ;;  %s5701_s8 = sld [smem:[#allocation19_spill]] (!%p641_p9) }
  0x24   : > { %v714_v2 = vld [vmem:[%s5691_s0] sm:$0xff] (!%p641_p9)  ;;  %v4144_v3 = vpack.c.bf16 (!%p641_p9), %v731_v1, %v730_v0  ;;  %v715_v4 = vld [vmem:[%s5691_s0 + $0x8] sm:$0xff] (!%p641_p9)  ;;  %v733_v13 = vld [vmem:[%s5691_s0 + $0x98] sm:$0xff] (!%p641_p9) }
  0x25   : > { %v762_v5 = vld [vmem:[%s5691_s0 + $0x180] sm:$0xff]  ;;  %v763_v6 = vld [vmem:[%s5691_s0 + $0x188] sm:$0xff]  ;;  %v4146_v7 = vpack.c.bf16 %v715_v4, %v714_v2  ;;  %v716_v14 = vld [vmem:[%s5691_s0 + $0x10] sm:$0xff]  ;;  %v4148_v16 = vpack.c.bf16 %v733_v13, %v732_v11  ;;  %s4801_s24 = scalar_select %p703_p10, %s4680_s5, 1 }
  0x26   : > { %v4176_v8 = vpack.c.bf16 %v763_v6, %v762_v5  ;;  %v746_v9 = vld [vmem:[%s5691_s0 + $0x100] sm:$0xff]  ;;  %v747_v10 = vld [vmem:[%s5691_s0 + $0x108] sm:$0xff]  ;;  %4145 = vmatprep.subr.bf16.mxu0 %v4144_v3  ;;  %v717_v15 = vld [vmem:[%s5691_s0 + $0x18] sm:$0xff]  ;;  %s5695_s28 = smov %s5694_s4 }
  0x27   : > { %v4178_v12 = vpack.c.bf16 %v747_v10, %v746_v9  ;;  %4147 = vmatpush3.bf16.msra.mxu0 %v4146_v7  ;;  %v4150_v17 = vpack.c.bf16 %v717_v15, %v716_v14  ;;  %v764_v18 = vld [vmem:[%s5691_s0 + $0x190] sm:$0xff]  ;;  %v765_v19 = vld [vmem:[%s5691_s0 + $0x198] sm:$0xff]  ;;  %v734_v23 = vld [vmem:[%s5691_s0 + $0xa0] sm:$0xff]  ;;  %s4354_s27 = smul.u32 48, %s4801_s24  ;;  %s5666_s24 = smov 96  }
  0x28   : > { %4177 = vmatprep.subr.bf16.mxu1 %v4176_v8  ;;  %v748_v20 = vld [vmem:[%s5691_s0 + $0x110] sm:$0xff]  ;;  %v4180_v21 = vpack.c.bf16 %v765_v19, %v764_v18  ;;  %v749_v22 = vld [vmem:[%s5691_s0 + $0x118] sm:$0xff]  ;;  %v735_v24 = vld [vmem:[%s5691_s0 + $0xa8] sm:$0xff]  ;;  %4149 = vmatprep.subr.bf16.mxu0 %v4148_v16 }
  0x29   : > { %4179 = vmatpush3.bf16.msra.mxu1 %v4178_v12  ;;  %v4182_v25 = vpack.c.bf16 %v749_v22, %v748_v20  ;;  %v4152_v26 = vpack.c.bf16 %v735_v24, %v734_v23  ;;  %v718_v27 = vld [vmem:[%s5691_s0 + $0x20] sm:$0xff]  ;;  %v719_v28 = vld [vmem:[%s5691_s0 + $0x28] sm:$0xff]  ;;  %v736_v35 = vld [vmem:[%s5691_s0 + $0xb0] sm:$0xff]  ;;  %s4858_s3 = scalar_lea.vmem %s5692_s29, %s4354_s27  ;;  %s5663_s29 = smov 64  }
  0x2a   : > { %v766_v29 = vld [vmem:[%s5691_s0 + $0x1a0] sm:$0xff]  ;;  %4181 = vmatprep.subr.bf16.mxu1 %v4180_v21  ;;  %v767_v30 = vld [vmem:[%s5691_s0 + $0x1a8] sm:$0xff]  ;;  %v4154_v33 = vpack.c.bf16 %v719_v28, %v718_v27  ;;  %v737_v36 = vld [vmem:[%s5691_s0 + $0xb8] sm:$0xff] }
  0x2b   : > { %v750_v31 = vld [vmem:[%s5691_s0 + $0x120] sm:$0xff]  ;;  %v751_v32 = vld [vmem:[%s5691_s0 + $0x128] sm:$0xff]  ;;  %4151 = vmatpush3.bf16.msra.mxu0 %v4150_v17  ;;  %v4184_v34 = vpack.c.bf16 %v767_v30, %v766_v29  ;;  %v720_v37 = vld [vmem:[%s5691_s0 + $0x30] sm:$0xff]  ;;  %v4156_v39 = vpack.c.bf16 %v737_v36, %v736_v35 }
  0x2c   : > { %4153 = vmatprep.subr.bf16.mxu0 %v4152_v26  ;;  %v4186_v38 = vpack.c.bf16 %v751_v32, %v750_v31  ;;  %v721_v40 = vld [vmem:[%s5691_s0 + $0x38] sm:$0xff]  ;;  %v768_v41 = vld [vmem:[%s5691_s0 + $0x1b0] sm:$0xff]  ;;  %v738_v46 = vld [vmem:[%s5691_s0 + $0xc0] sm:$0xff] }
  0x2d   : > { %4183 = vmatpush3.bf16.msra.mxu1 %v4182_v25  ;;  %v769_v42 = vld [vmem:[%s5691_s0 + $0x1b8] sm:$0xff]  ;;  %v752_v44 = vld [vmem:[%s5691_s0 + $0x130] sm:$0xff]  ;;  %v739_v47 = vld [vmem:[%s5691_s0 + $0xc8] sm:$0xff]  ;;  %v4158_v48 = vpack.c.bf16 %v721_v40, %v720_v37 }
  0x2e   : > { %4185 = vmatprep.subr.bf16.mxu1 %v4184_v34  ;;  %v4188_v43 = vpack.c.bf16 %v769_v42, %v768_v41  ;;  %v753_v45 = vld [vmem:[%s5691_s0 + $0x138] sm:$0xff]  ;;  %v770_v49 = vld [vmem:[%s5691_s0 + $0x1c0] sm:$0xff]  ;;  %v771_v50 = vld [vmem:[%s5691_s0 + $0x1c8] sm:$0xff]  ;;  %v4160_v52 = vpack.c.bf16 %v739_v47, %v738_v46 }
  0x2f   : > { %4155 = vmatpush3.bf16.msra.mxu0 %v4154_v33  ;;  %v4190_v51 = vpack.c.bf16 %v753_v45, %v752_v44  ;;  %v722_v53 = vld [vmem:[%s5691_s0 + $0x40] sm:$0xff]  ;;  %v723_v54 = vld [vmem:[%s5691_s0 + $0x48] sm:$0xff]  ;;  %v4192_v56 = vpack.c.bf16 %v771_v50, %v770_v49  ;;  %v740_v58 = vld [vmem:[%s5691_s0 + $0xd0] sm:$0xff] }
  0x30   : > { %4157 = vmatprep.subr.bf16.mxu0 %v4156_v39  ;;  %v754_v55 = vld [vmem:[%s5691_s0 + $0x140] sm:$0xff]  ;;  %v755_v57 = vld [vmem:[%s5691_s0 + $0x148] sm:$0xff]  ;;  %v741_v59 = vld [vmem:[%s5691_s0 + $0xd8] sm:$0xff]  ;;  %v4162_v62 = vpack.c.bf16 %v723_v54, %v722_v53 }
  0x31   : > { %4187 = vmatpush3.bf16.msra.mxu1 %v4186_v38  ;;  %v772_v60 = vld [vmem:[%s5691_s0 + $0x1d0] sm:$0xff]  ;;  %v773_v61 = vld [vmem:[%s5691_s0 + $0x1d8] sm:$0xff]  ;;  %v4194_v63 = vpack.c.bf16 %v755_v57, %v754_v55  ;;  %v4164_v0 = vpack.c.bf16 %v741_v59, %v740_v58  ;;  %v742_v6 = vld [vmem:[%s5691_s0 + $0xe0] sm:$0xff] }
  0x32   : > { %4189 = vmatprep.subr.bf16.mxu1 %v4188_v43  ;;  %v724_v1 = vld [vmem:[%s5691_s0 + $0x50] sm:$0xff]  ;;  %v725_v2 = vld [vmem:[%s5691_s0 + $0x58] sm:$0xff]  ;;  %v4196_v4 = vpack.c.bf16 %v773_v61, %v772_v60  ;;  %v743_v7 = vld [vmem:[%s5691_s0 + $0xe8] sm:$0xff] }
  0x33   : > { %4159 = vmatpush3.bf16.msra.mxu0 %v4158_v48  ;;  %v756_v3 = vld [vmem:[%s5691_s0 + $0x150] sm:$0xff]  ;;  %v757_v5 = vld [vmem:[%s5691_s0 + $0x158] sm:$0xff]  ;;  %v774_v8 = vld [vmem:[%s5691_s0 + $0x1e0] sm:$0xff]  ;;  %v4166_v10 = vpack.c.bf16 %v725_v2, %v724_v1  ;;  %v4168_v14 = vpack.c.bf16 %v743_v7, %v742_v6 }
  0x34   : > { %4161 = vmatprep.subr.bf16.mxu0 %v4160_v52  ;;  %v775_v9 = vld [vmem:[%s5691_s0 + $0x1e8] sm:$0xff]  ;;  %v726_v11 = vld [vmem:[%s5691_s0 + $0x60] sm:$0xff]  ;;  %v4198_v13 = vpack.c.bf16 %v757_v5, %v756_v3  ;;  %v744_v19 = vld [vmem:[%s5691_s0 + $0xf0] sm:$0xff] }
  0x35   : > { %4191 = vmatpush3.bf16.msra.mxu1 %v4190_v51  ;;  %v709_v12 = vld [vmem:[%s4858_s3 + $0x8] sm:$0x1f]  ;;  %v758_v16 = vld [vmem:[%s5691_s0 + $0x160] sm:$0xff]  ;;  %v4200_v18 = vpack.c.bf16 %v775_v9, %v774_v8  ;;  %v745_v20 = vld [vmem:[%s5691_s0 + $0xf8] sm:$0xff] }
  0x36   : > { %4193 = vmatprep.subr.bf16.mxu1 %v4192_v56  ;;  %v727_v15 = vld [vmem:[%s5691_s0 + $0x68] sm:$0xff]  ;;  %875 = vmatprep.mubr.f32.mxu0 %v709_v12  ;;  %v711_v21 = vld [vmem:[%s4858_s3 + $0x18] sm:$0x1f]  ;;  %v776_v22 = vld [vmem:[%s5691_s0 + $0x1f0] sm:$0xff]  ;;  %v4172_v26 = vpack.c.bf16 %v745_v20, %v744_v19 }
  0x37   : > { %4163 = vmatpush3.bf16.msra.mxu0 %v4162_v62  ;;  %v759_v17 = vld [vmem:[%s5691_s0 + $0x168] sm:$0xff]  ;;  %v777_v23 = vld [vmem:[%s5691_s0 + $0x1f8] sm:$0xff]  ;;  %945 = vmatprep.mubr.f32.mxu1 %v711_v21  ;;  %v4170_v24 = vpack.c.bf16 %v727_v15, %v726_v11  ;;  %v728_v27 = vld [vmem:[%s5691_s0 + $0x70] sm:$0xff] }
  0x38   : > { %4165 = vmatprep.subr.bf16.mxu0 %v4164_v0  ;;  %v4202_v25 = vpack.c.bf16 %v759_v17, %v758_v16  ;;  %v729_v28 = vld [vmem:[%s5691_s0 + $0x78] sm:$0xff]  ;;  %v760_v29 = vld [vmem:[%s5691_s0 + $0x170] sm:$0xff]  ;;  %v4204_v30 = vpack.c.bf16 %v777_v23, %v776_v22  ;;  %v794_v32 = vld [vmem:[%s5691_s0 + $0x280] sm:$0xff] }
  0x39   : > { %4195 = vmatpush3.bf16.msra.mxu1 %v4194_v63  ;;  %v761_v31 = vld [vmem:[%s5691_s0 + $0x178] sm:$0xff]  ;;  %v795_v33 = vld [vmem:[%s5691_s0 + $0x288] sm:$0xff]  ;;  %v4174_v34 = vpack.c.bf16 %v729_v28, %v728_v27  ;;  %v778_v37 = vld [vmem:[%s5691_s0 + $0x200] sm:$0xff] }
  0x3a   : > { %4197 = vmatprep.subr.bf16.mxu1 %v4196_v4  ;;  %v4206_v35 = vpack.c.bf16 %v761_v31, %v760_v29  ;;  %v4208_v36 = vpack.c.bf16 %v795_v33, %v794_v32  ;;  %v779_v38 = vld [vmem:[%s5691_s0 + $0x208] sm:$0xff]  ;;  %v796_v39 = vld [vmem:[%s5691_s0 + $0x290] sm:$0xff]  ;;  %v797_v40 = vld [vmem:[%s5691_s0 + $0x298] sm:$0xff] }
  0x3b   : > { %4167 = vmatpush3.bf16.msra.mxu0 %v4166_v10  ;;  %v708_v41 = vld [vmem:[%s4858_s3] sm:$0x1f]  ;;  %v4210_v42 = vpack.c.bf16 %v779_v38, %v778_v37  ;;  %v710_v43 = vld [vmem:[%s4858_s3 + $0x10] sm:$0x1f]  ;;  %v4212_v44 = vpack.c.bf16 %v797_v40, %v796_v39  ;;  %v781_v46 = vld [vmem:[%s5691_s0 + $0x218] sm:$0xff] }
  0x3c   : > { %4169 = vmatprep.subr.bf16.mxu0 %v4168_v14  ;;  %v780_v45 = vld [vmem:[%s5691_s0 + $0x210] sm:$0xff]  ;;  %v798_v47 = vld [vmem:[%s5691_s0 + $0x2a0] sm:$0xff]  ;;  %v799_v48 = vld [vmem:[%s5691_s0 + $0x2a8] sm:$0xff] }
  0x3d   : > { %4199 = vmatpush3.bf16.msra.mxu1 %v4198_v13  ;;  %v713_v49 = vld [vmem:[%s4858_s3 + $0x28] sm:$0x1f]  ;;  %v4214_v50 = vpack.c.bf16 %v781_v46, %v780_v45  ;;  %v4216_v51 = vpack.c.bf16 %v799_v48, %v798_v47  ;;  %v782_v52 = vld [vmem:[%s5691_s0 + $0x220] sm:$0xff]  ;;  %v800_v54 = vld [vmem:[%s5691_s0 + $0x2b0] sm:$0xff]  ;;  %v4523_v48 = vmov 0.0  }
  0x3e   : > { %4201 = vmatprep.subr.bf16.mxu1 %v4200_v18  ;;  %v783_v53 = vld [vmem:[%s5691_s0 + $0x228] sm:$0xff]  ;;  %v801_v55 = vld [vmem:[%s5691_s0 + $0x2b8] sm:$0xff]  ;;  %v784_v58 = vld [vmem:[%s5691_s0 + $0x230] sm:$0xff] }
  0x3f   : > { %4171 = vmatpush3.bf16.msra.mxu0 %v4170_v24  ;;  %v4218_v56 = vpack.c.bf16 %v783_v53, %v782_v52  ;;  %v4220_v57 = vpack.c.bf16 %v801_v55, %v800_v54  ;;  %v785_v59 = vld [vmem:[%s5691_s0 + $0x238] sm:$0xff]  ;;  %v802_v60 = vld [vmem:[%s5691_s0 + $0x2c0] sm:$0xff]  ;;  %v803_v61 = vld [vmem:[%s5691_s0 + $0x2c8] sm:$0xff] }
  0x40   : > { %4173 = vmatprep.subr.bf16.mxu0 %v4172_v26  ;;  %v4222_v62 = vpack.c.bf16 %v785_v59, %v784_v58  ;;  %v4224_v63 = vpack.c.bf16 %v803_v61, %v802_v60  ;;  %v786_v0 = vld [vmem:[%s5691_s0 + $0x240] sm:$0xff]  ;;  %v787_v1 = vld [vmem:[%s5691_s0 + $0x248] sm:$0xff]  ;;  %v804_v2 = vld [vmem:[%s5691_s0 + $0x2d0] sm:$0xff] }
  0x41   : > { %4203 = vmatpush3.bf16.msra.mxu1 %v4202_v25  ;;  %v805_v3 = vld [vmem:[%s5691_s0 + $0x2d8] sm:$0xff]  ;;  %v4226_v4 = vpack.c.bf16 %v787_v1, %v786_v0  ;;  %v788_v6 = vld [vmem:[%s5691_s0 + $0x250] sm:$0xff]  ;;  %v806_v8 = vld [vmem:[%s5691_s0 + $0x2e0] sm:$0xff] }
  0x42   : > { %4205 = vmatprep.subr.bf16.mxu1 %v4204_v30  ;;  %v4228_v5 = vpack.c.bf16 %v805_v3, %v804_v2  ;;  %v789_v7 = vld [vmem:[%s5691_s0 + $0x258] sm:$0xff]  ;;  %v807_v9 = vld [vmem:[%s5691_s0 + $0x2e8] sm:$0xff]  ;;  %v790_v12 = vld [vmem:[%s5691_s0 + $0x260] sm:$0xff] }
  0x43   : > { %4175 = vmatpush3.bf16.msra.mxu0 %v4174_v34  ;;  %v4230_v10 = vpack.c.bf16 %v789_v7, %v788_v6  ;;  %v4232_v11 = vpack.c.bf16 %v807_v9, %v806_v8  ;;  %v791_v13 = vld [vmem:[%s5691_s0 + $0x268] sm:$0xff]  ;;  %v808_v14 = vld [vmem:[%s5691_s0 + $0x2f0] sm:$0xff]  ;;  %v809_v15 = vld [vmem:[%s5691_s0 + $0x2f8] sm:$0xff] }
  0x44   : > { %4209 = vmatprep.subr.bf16.mxu0 %v4208_v36  ;;  %v4234_v16 = vpack.c.bf16 %v791_v13, %v790_v12  ;;  %v4236_v17 = vpack.c.bf16 %v809_v15, %v808_v14  ;;  %v792_v18 = vld [vmem:[%s5691_s0 + $0x270] sm:$0xff]  ;;  %v793_v19 = vld [vmem:[%s5691_s0 + $0x278] sm:$0xff]  ;;  %v712_v21 = vld [vmem:[%s4858_s3 + $0x20] sm:$0x1f]  ;;  %s5656_s3 = smov 56   ;;  %s5707_s0 = smov 112  }
  0x45   : > { %4207 = vmatpush3.bf16.msra.mxu1 %v4206_v35  ;;  %v4238_v20 = vpack.c.bf16 %v793_v19, %v792_v18  ;;  %v810_v23 = vld [vmem:[%s5693_s1] sm:$0x1f]  ;;  %v1054_v45 = vld [vmem:[%s5695_s28 + $0x10] sm:$0xff]  ;;  %v1055_v46 = vld [vmem:[%s5695_s28 + $0x18] sm:$0xff]  ;;  %s5696_s1 = sld [smem:[#allocation14_spill]] }
  0x46   : > { %876 = vmatmul.mubr.f32.vlgmr.msra.gmra.mrb[0].mxu0 %v708_v41  ;;  %v1052_v41 = vld [vmem:[%s5694_s4] sm:$0xff]  ;;  %v4244_v47 = vpack.c.bf16 %v1055_v46, %v1054_v45  ;;  %s5697_s4 = sld [smem:[#allocation15_spill]] }
  0x47   : > { %4211 = vmatpush3.bf16.msra.mxu0 %v4210_v42  ;;  %1015 = vmatprep.mubr.f32.mxu0 %v713_v49  ;;  %v1053_v42 = vld [vmem:[%s5695_s28 + $0x8] sm:$0xff]  ;;  %v3561_v58 = vld [vmem:[%s5699_s2] ss:$0 sm:$0xff] }
  0x48   : > { %946 = vmatmul.mubr.f32.vlgmr.msra.gmra.mrb[0].mxu1 %v710_v43  ;;  %4213 = vmatprep.subr.bf16.mxu0 %v4212_v44  ;;  %v4241_v43 = vpack.c.bf16 %v1053_v42, %v1052_v41  ;;  %v4521_v44 = vmov 0.0|0.0  }
  0x49   : > { %4240 = vmatprep.subr.bf16.mxu1 %v4521_v44  ;;  %3887 = vmatprep.mubr.msk.f32.mxu1 %vm4522_vm1, %v4523_v48 }
  0x4a   : > { %4242 = vmatpush3.bf16.msra.mxu1 %v4241_v43 }
  0x4b   : > { %4215 = vmatpush3.bf16.msra.mxu0 %v4214_v50  ;;  %4243 = vmatprep.subr.bf16.mxu1 %v4521_v44  ;;  %v3559_v53 = vld [vmem:[%s5696_s1] ss:$0 sm:$0xff] }
  0x4c   : > { %4217 = vmatprep.subr.bf16.mxu0 %v4216_v51  ;;  %s5698_s27 = smov %s5697_s4  ;;  %v3560_v55 = vld [vmem:[%s5697_s4] ss:$0 sm:$0xff]  ;;  %s5661_s4 = smov 112  }
  0x4e   : > { %4245 = vmatpush3.bf16.msra.mxu1 %v4244_v47 }
  0x4f   : > { %4219 = vmatpush3.bf16.msra.mxu0 %v4218_v56  ;;  %3895 = vmatprep.subr.mxu1 %v4523_v48 }
  0x50   : > { %4221 = vmatprep.subr.bf16.mxu0 %v4220_v57 }
  0x53   : > { %4223 = vmatpush3.bf16.msra.mxu0 %v4222_v62 }
  0x54   : > { %4225 = vmatprep.subr.bf16.mxu0 %v4224_v63 }
  0x57   : > { %4227 = vmatpush3.bf16.msra.mxu0 %v4226_v4 }
  0x58   : > { %4229 = vmatprep.subr.bf16.mxu0 %v4228_v5 }
  0x5b   : > { %4231 = vmatpush3.bf16.msra.mxu0 %v4230_v10 }
  0x5c   : > { %4233 = vmatprep.subr.bf16.mxu0 %v4232_v11 }
  0x5f   : > { %4235 = vmatpush3.bf16.msra.mxu0 %v4234_v16 }
  0x60   : > { %4237 = vmatprep.subr.bf16.mxu0 %v4236_v17 }
  0x63   : > { %4239 = vmatpush3.bf16.msra.mxu0 %v4238_v20 }
  0x64   : > { %3890 = vmatprep.subr.mxu0 %v4523_v48 }
  0x66   : > { %1016 = vmatmul.mubr.f32.vlgmr.msra.gmra.mrb[2].mxu0 %v712_v21 }
  0x67   : > { %3892 = vmatprep.mubr.msk.f32.mxu0 %vm4522_vm1, %v4523_v48 }
 0x119   : > { %v3687_v22 = vpop.f32.mrb[0].mxu0 }
 0x11a   : > { %v3688_v24 = vpop.f32.mrb[1].mxu0 }
 0x11b   : > { %v3722_v25 = vpop.f32.mrb[0].mxu1  ;;  %v3689_v26 = vadd.f32 %v3688_v24, %v3687_v22 }
 0x11c   : > { %v3723_v27 = vpop.f32.mrb[1].mxu1 }
 0x11d   : > { %v3724_v28 = vadd.f32 %v3723_v27, %v3722_v25  ;;  %v878_v29 = vadd.f32 %v3689_v26, %v810_v23 }
 0x11f   : > { %v948_v30 = vadd.f32 %v3724_v28, %v878_v29 }
 0x139   : > { %v3757_v31 = vpop.f32.mrb[2].mxu0 }
 0x13a   : > { %v3758_v32 = vpop.f32.mrb[3].mxu0 }
 0x13b   : > { %v3759_v33 = vadd.f32 %v3758_v32, %v3757_v31 }
 0x13d   : > { %v5016_v34 = vadd.f32 %v3759_v33, %v948_v30 }
 0x13f   : > { %v1024_v35 = vsel %vm1023_vm0, %v5016_v34, 0.0 }
 0x140   : > { %1025 = vadd.xlane.f32.xlu0 %v1024_v35 }
 0x1cd   : > { %v1026_v36 = vpop.xlane.xlu0 %1025 }
 0x1ce   : > { %v1028_v37 = vmul.f32 0.03125, %v1026_v36 }
 0x1d0   : > { %v1029_v38 = vsub.f32 %v5016_v34, %v1028_v37 }
 0x1d2   : > { %v1030_v39 = vmul.f32 %v1029_v38, %v1029_v38 }
 0x1d4   : > { %v1031_v40 = vsel %vm1023_vm0, %v1030_v39, 0.0 }
 0x1d5   : > { %1032 = vadd.xlane.f32.xlu0 %v1031_v40 }
 0x262   : > { %v1033_v49 = vpop.xlane.xlu0 %1032 }
 0x263   : > { %v1034_v50 = vmul.f32 0.03125, %v1033_v49 }
 0x265   : > { %v1035_v51 = vadd.f32 1e-06, %v1034_v50 }
 0x267   : > { %4411 = vrsqrt.f32 %v1035_v51 }
 0x271   : > { %v4412_v52 = vpop.eup %4411 }
 0x272   : > { %v1037_v54 = vmul.f32 %v4412_v52, %v1029_v38 }
 0x274   : > { %v1044_v56 = vmul.f32 %v3559_v53, %v1037_v54 }
 0x276   : > { %v1051_v57 = vadd.f32 %v3560_v55, %v1044_v56 }
 0x278   : > { %3888 = vmatmul.mubr.msk.f32.vlgmr.msra.gmra.mrb[2].mxu1 %vm1063_vm2, %v1051_v57 }
 0x279   : > { %3897 = vmatprep.mubr.msk.f32.mxu1 %vm4522_vm1, %v4523_v48 }
 0x34b   : > { %v1133_v59 = vpop.f32.mrb[2].mxu1 }
 0x34c   : > { %v5054_v60 = vadd.f32 %v3561_v58, %v1133_v59  ;;  %v3889_v61 = vpop.f32.mrb[3].mxu1 }
 0x34e   : > { %1227 = vrot.lane.b32.xlu0 %v5054_v60, %s5663_s29  ;;  %1138 = vrot.lane.b32.xlu1 %v5054_v60, %s5666_s24  ;;  %s5706_s29 = smov 80   ;;  %s5708_s24 = smov 104  }
 0x352   : > { %1308 = vrot.lane.b32.xlu0 %v5054_v60, %s5665_s23  ;;  %s5702_s23 = smov 96  }
 0x3c0   : > { %v1228_v62 = vpop.permute.xlu0 %1227  ;;  %v1139_v63 = vpop.permute.xlu1 %1138 }
 0x3c1   : > { %3891 = vmatpush3.xpose.msk.msra.mxu0 %vm1140_vm3, %v1139_v63  ;;  %3896 = vmatpush3.msk.msra.mxu1 %vm1233_vm4, %v1228_v62 }
 0x3c2   : > { %3900 = vmatprep.subr.mxu1 %v4523_v48  ;;  %3920 = vmatprep.subr.mxu0 %v4523_v48 }
 0x3c4   : > { %3893 = vmatmul.mubr.msk.f32.vlgmr.msra.gmra.mrb[4].mxu0 %vm1140_vm3, %v5054_v60  ;;  %v1309_v8 = vpop.permute.xlu0 %1308 }
 0x3c5   : > { %3922 = vmatprep.mubr.msk.f32.mxu0 %vm4522_vm1, %v4523_v48 }
 0x497   : > { %v1211_v0 = vpop.f32.mrb[4].mxu0 }
 0x498   : > { %v3894_v1 = vpop.f32.mrb[5].mxu0  ;;  %v1216_v2 = vsel %vm1215_vm5, %v1211_v0, -inf }
 0x499   : > { %1217 = vmax.xlane.f32.xlu1 %v1216_v2 }
 0x526   : > { %v1218_v3 = vpop.xlane.xlu1 %1217 }
 0x527   : > { %v1219_v4 = vsub.f32 %v1211_v0, %v1218_v3 }
 0x529   : > { %v1220_v5 = vmul.f32 1.442695, %v1219_v4 }
 0x52b   : > { %4413 = vpow2.f32 %v1220_v5 }
 0x535   : > { %v4414_v6 = vpop.eup %4413 }
 0x536   : > { %v1222_v7 = vsel %vm1215_vm5, %v4414_v6, 0.0 }
 0x537   : > { %1223 = vadd.xlane.f32.xlu0 %v1222_v7 }
 0x54d   : > { %1306 = vrot.lane.b32.xlu0 %v5054_v60, %s5664_s6  ;;  %s5703_s6 = smov 88  }
 0x5c4   : > { %v1224_v9 = vpop.xlane.xlu0 %1223 }
 0x5c5   : > { %4415 = vrcp.f32 %v1224_v9 }
 0x5c8   : > { %v1307_v12 = vpop.permute.xlu0 %1306 }
 0x5cf   : > { %v4416_v10 = vpop.eup %4415 }
 0x5d0   : > { %v1226_v11 = vmul.f32 %v4416_v10, %v4414_v6 }
 0x5d2   : > { %3898 = vmatmul.mubr.msk.f32.vlgmr.msra.gmra.mrb[4].mxu1 %vm1229_vm6, %v1226_v11 }
 0x5d3   : > { %3901 = vmatpush3.xpose.msk.msra.mxu1 %vm1140_vm3, %v1309_v8  ;;  %3902 = vmatprep.mubr.msk.f32.mxu1 %vm4522_vm1, %v4523_v48 }
 0x5d4   : > { %3905 = vmatprep.subr.mxu1 %v4523_v48 }
 0x5d6   : > { %3903 = vmatmul.mubr.msk.f32.vlgmr.msra.gmra.mrb[6].mxu1 %vm1140_vm3, %v1307_v12 }
 0x5d7   : > { %3907 = vmatprep.mubr.msk.f32.mxu1 %vm4522_vm1, %v4523_v48 }
 0x6a5   : > { %v5082_v13 = vpop.f32.mrb[4].mxu1 }
 0x6a6   : > { %v3899_v14 = vpop.f32.mrb[5].mxu1 }
 0x6a7   : > { %v3580_v14 = vld [vmem:[%s5701_s8] ss:$0 sm:$0xff] }
 0x6a9   : > { %v1380_v15 = vpop.f32.mrb[6].mxu1 }
 0x6aa   : > { %v3904_v16 = vpop.f32.mrb[7].mxu1  ;;  %v1384_v17 = vsel %vm1215_vm5, %v1380_v15, -inf }
 0x6ab   : > { %1385 = vmax.xlane.f32.xlu1 %v1384_v17 }
 0x6bc   : > { %1395 = vrot.lane.b32.xlu1 %v5054_v60, %s5656_s3  ;;  %s5659_s3 = smov 48  }
 0x6c0   : > { %1474 = vrot.lane.b32.xlu1 %v5054_v60, %s5662_s26  ;;  %s5667_s26 = smov 24  }
 0x6c4   : > { %1472 = vrot.lane.b32.xlu1 %v5054_v60, %s5661_s4  ;;  %s5704_s4 = smov 120  }
 0x6c8   : > { %1640 = vrot.lane.b32.xlu1 %v5054_v60, %s5655_s25  ;;  %s5657_s25 = smov 40  }
 0x738   : > { %v1386_v18 = vpop.xlane.xlu1 %1385 }
 0x739   : > { %v1387_v19 = vsub.f32 %v1380_v15, %v1386_v18 }
 0x73b   : > { %v1388_v20 = vmul.f32 1.442695, %v1387_v19 }
 0x73c   : > { %v1396_v21 = vpop.permute.xlu1 %1395 }
 0x73d   : > { %4417 = vpow2.f32 %v1388_v20  ;;  %3906 = vmatpush3.msk.msra.mxu1 %vm1233_vm4, %v1396_v21 }
 0x73e   : > { %3910 = vmatprep.subr.mxu1 %v4523_v48 }
 0x740   : > { %v1475_v22 = vpop.permute.xlu1 %1474 }
 0x744   : > { %v1473_v23 = vpop.permute.xlu1 %1472 }
 0x747   : > { %v4418_v24 = vpop.eup %4417 }
 0x748   : > { %v1641_v25 = vpop.permute.xlu1 %1640  ;;  %v1390_v26 = vsel %vm1215_vm5, %v4418_v24, 0.0 }
 0x749   : > { %1391 = vadd.xlane.f32.xlu0 %v1390_v26  ;;  %3921 = vmatpush3.xpose.msk.msra.mxu0 %vm1140_vm3, %v1641_v25  ;;  %v1938_v25 = vld [vmem:[%s5629_s11 + $0x10] sm:$0xff]  ;;  %v1939_v26 = vld [vmem:[%s5629_s11 + $0x18] sm:$0xff] }
 0x74a   : > { %4246 = vmatprep.subr.bf16.mxu0 %v4521_v44 }
 0x75f   : > { %1638 = vrot.lane.b32.xlu0 %v5054_v60, %s5660_s22  ;;  %s5700_s22 = sld [smem:[#allocation18_spill]] }
 0x765   : > { %v1822_v61 = vld [vmem:[%s5700_s22 + $0x8] sm:$0xff]  ;;  %v1823_v63 = vld [vmem:[%s5700_s22 + $0x10] sm:$0xff]  ;;  %v1824_v0 = vld [vmem:[%s5700_s22 + $0x18] sm:$0xff] }
 0x766   : > { %v4250_v1 = vpack.c.bf16 %v1824_v0, %v1823_v63  ;;  %v3583_v0 = vld [vmem:[%s5630_s12] ss:$0 sm:$0xff] }
 0x7d6   : > { %v1392_v27 = vpop.xlane.xlu0 %1391 }
 0x7d7   : > { %4419 = vrcp.f32 %v1392_v27  ;;  %v4256_v27 = vpack.c.bf16 %v1939_v26, %v1938_v25 }
 0x7da   : > { %v1639_v28 = vpop.permute.xlu0 %1638 }
 0x7db   : > { %3923 = vmatmul.mubr.msk.f32.vlgmr.msra.gmra.mrb[6].mxu0 %vm1140_vm3, %v1639_v28  ;;  %v2025_v28 = vld [vmem:[%s5631_s13] sm:$0xff] }
 0x7dc   : > { %3938 = vmatprep.mubr.msk.f32.mxu0 %vm4522_vm1, %v4523_v48 }
 0x7e1   : > { %v4420_v29 = vpop.eup %4419 }
 0x7e2   : > { %v1394_v30 = vmul.f32 %v4420_v29, %v4418_v24  ;;  %v2026_v29 = vld [vmem:[%s5631_s13 + $0x8] sm:$0xff] }
 0x7e4   : > { %3908 = vmatmul.mubr.msk.f32.vlgmr.msra.gmra.mrb[8].mxu1 %vm1229_vm6, %v1394_v30  ;;  %v2027_v30 = vld [vmem:[%s5631_s13 + $0x10] sm:$0xff] }
 0x7e5   : > { %3911 = vmatpush3.xpose.msk.msra.mxu1 %vm1140_vm3, %v1475_v22  ;;  %3912 = vmatprep.mubr.msk.f32.mxu1 %vm4522_vm1, %v4523_v48 }
 0x7e6   : > { %3915 = vmatprep.subr.mxu1 %v4523_v48 }
 0x7e8   : > { %3913 = vmatmul.mubr.msk.f32.vlgmr.msra.gmra.mrb[10].mxu1 %vm1140_vm3, %v1473_v23  ;;  %v1936_v23 = vld [vmem:[%s5629_s11] sm:$0xff] }
 0x7e9   : > { %3917 = vmatprep.mubr.msk.f32.mxu1 %vm4522_vm1, %v4523_v48 }
 0x8ae   : > { %v1712_v31 = vpop.f32.mrb[6].mxu0 }
 0x8af   : > { %v3924_v32 = vpop.f32.mrb[7].mxu0  ;;  %v1716_v33 = vsel %vm1215_vm5, %v1712_v31, -inf }
 0x8b0   : > { %1717 = vmax.xlane.f32.xlu0 %v1716_v33  ;;  %v2028_v32 = vld [vmem:[%s5631_s13 + $0x18] sm:$0xff] }
 0x8b1   : > { %v4262_v33 = vpack.c.bf16 %v2028_v32, %v2027_v30 }
 0x8b7   : > { %v1468_v35 = vpop.f32.mrb[8].mxu1 }
 0x8b8   : > { %v3909_v36 = vpop.f32.mrb[9].mxu1 }
 0x8b9   : > { %v2030_v36 = vld [vmem:[%s5631_s13 + $0x28] sm:$0xff] }
 0x8bb   : > { %v1546_v37 = vpop.f32.mrb[10].mxu1 }
 0x8bc   : > { %v3914_v38 = vpop.f32.mrb[11].mxu1  ;;  %v1550_v39 = vsel %vm1215_vm5, %v1546_v37, -inf }
 0x8bd   : > { %1551 = vmax.xlane.f32.xlu1 %v1550_v39 }
 0x8c6   : > { %1727 = vrot.lane.b32.xlu0 %v5054_v60, %s5657_s25  ;;  %s5658_s25 = smov 8  }
 0x93d   : > { %v1718_v40 = vpop.xlane.xlu0 %1717 }
 0x93e   : > { %v1719_v41 = vsub.f32 %v1712_v31, %v1718_v40  ;;  %v4259_v31 = vpack.c.bf16 %v2026_v29, %v2025_v28  ;;  %v3588_v29 = vld [vmem:[%s5696_s1 + $0x1] ss:$0 sm:$0xff] }
 0x940   : > { %v1720_v42 = vmul.f32 1.442695, %v1719_v41 }
 0x941   : > { %v1728_v58 = vpop.permute.xlu0 %1727 }
 0x942   : > { %4421 = vpow2.f32 %v1720_v42  ;;  %v3581_v42 = vld [vmem:[%s5627_s9] ss:$0 sm:$0xff] }
 0x94a   : > { %v1552_v43 = vpop.xlane.xlu1 %1551 }
 0x94b   : > { %v1553_v45 = vsub.f32 %v1546_v37, %v1552_v43 }
 0x94c   : > { %v4422_v46 = vpop.eup %4421 }
 0x94d   : > { %v1554_v47 = vmul.f32 1.442695, %v1553_v45  ;;  %v1722_v49 = vsel %vm1215_vm5, %v4422_v46, 0.0  ;;  %v3582_v45 = vld [vmem:[%s5628_s10] ss:$0 sm:$0xff] }
 0x94e   : > { %1723 = vadd.xlane.f32.xlu1 %v1722_v49  ;;  %v2031_v49 = vld [vmem:[%s5631_s13 + $0x30] sm:$0xff] }
 0x94f   : > { %4423 = vpow2.f32 %v1554_v47 }
 0x959   : > { %v4424_v50 = vpop.eup %4423 }
 0x95a   : > { %v1556_v51 = vsel %vm1215_vm5, %v4424_v50, 0.0 }
 0x95b   : > { %1557 = vadd.xlane.f32.xlu1 %v1556_v51 }
 0x96c   : > { %1561 = vrot.lane.b32.xlu1 %v5054_v60, %s5659_s3  ;;  %v1821_v60 = vld [vmem:[%s5700_s22] sm:$0xff]  ;;  %s5668_s3 = smov 16  }
 0x96d   : > { %v4247_v62 = vpack.c.bf16 %v1822_v61, %v1821_v60  ;;  %v2039_v61 = vld [vmem:[%s5631_s13 + $0x70] sm:$0xff] }
 0x96f   : > { %4248 = vmatpush3.bf16.msra.mxu0 %v4247_v62  ;;  %v2040_v62 = vld [vmem:[%s5631_s13 + $0x78] sm:$0xff] }
 0x970   : > { %1805 = vrot.lane.b32.xlu1 %v1468_v35, %s5658_s25  ;;  %4249 = vmatprep.subr.bf16.mxu0 %v4521_v44  ;;  %v2029_v35 = vld [vmem:[%s5631_s13 + $0x20] sm:$0xff]  ;;  %v4280_v63 = vpack.c.bf16 %v2040_v62, %v2039_v61  ;;  %s5705_s25 = smov 64  }
 0x971   : > { %v4265_v37 = vpack.c.bf16 %v2030_v36, %v2029_v35  ;;  %v3595_v35 = vld [vmem:[%s5699_s2 + $0x1] ss:$0 sm:$0xff] }
 0x973   : > { %4251 = vmatpush3.bf16.msra.mxu0 %v4250_v1 }
 0x974   : > { %4258 = vmatprep.subr.bf16.mxu0 %v4521_v44 }
 0x9db   : > { %v1724_v52 = vpop.xlane.xlu1 %1723 }
 0x9e8   : > { %v1558_v53 = vpop.xlane.xlu1 %1557 }
 0x9e9   : > { %4425 = vrcp.f32 %v1558_v53  ;;  %v2034_v53 = vld [vmem:[%s5631_s13 + $0x48] sm:$0xff] }
 0x9ea   : > { %4427 = vrcp.f32 %v1724_v52  ;;  %v2033_v52 = vld [vmem:[%s5631_s13 + $0x40] sm:$0xff] }
 0x9ec   : > { %v1562_v54 = vpop.permute.xlu1 %1561 }
 0x9ed   : > { %3916 = vmatpush3.msk.msra.mxu1 %vm1233_vm4, %v1562_v54  ;;  %v4271_v54 = vpack.c.bf16 %v2034_v53, %v2033_v52 }
 0x9ee   : > { %3925 = vmatprep.subr.mxu1 %v4523_v48 }
 0x9f0   : > { %v1806_v6 = vpop.permute.xlu1 %1805 }
 0x9f1   : > { %v1816_v8 = vsel %vm1140_vm3, %v5082_v13, %v1806_v6 }
 0x9f3   : > { %v4426_v55 = vpop.eup %4425 }
 0x9f4   : > { %v1560_v56 = vmul.f32 %v4426_v55, %v4424_v50  ;;  %v4428_v57 = vpop.eup %4427  ;;  %v2032_v50 = vld [vmem:[%s5631_s13 + $0x38] sm:$0xff]  ;;  %v2035_v55 = vld [vmem:[%s5631_s13 + $0x50] sm:$0xff] }
 0x9f5   : > { %v1726_v59 = vmul.f32 %v4428_v57, %v4422_v46  ;;  %v4268_v51 = vpack.c.bf16 %v2032_v50, %v2031_v49 }
 0x9f6   : > { %3918 = vmatmul.mubr.msk.f32.vlgmr.msra.gmra.mrb[12].mxu1 %vm1229_vm6, %v1560_v56  ;;  %v2036_v56 = vld [vmem:[%s5631_s13 + $0x58] sm:$0xff] }
 0x9f7   : > { %3926 = vmatpush3.msk.msra.mxu1 %vm1233_vm4, %v1728_v58  ;;  %3927 = vmatprep.mubr.msk.f32.mxu1 %vm4522_vm1, %v4523_v48  ;;  %v4274_v57 = vpack.c.bf16 %v2036_v56, %v2035_v55  ;;  %v2037_v58 = vld [vmem:[%s5631_s13 + $0x60] sm:$0xff] }
 0x9f8   : > { %4252 = vmatprep.subr.bf16.mxu1 %v4521_v44 }
 0x9fa   : > { %3928 = vmatmul.mubr.msk.f32.vlgmr.msra.gmra.mrb[14].mxu1 %vm1229_vm6, %v1726_v59  ;;  %v2038_v59 = vld [vmem:[%s5631_s13 + $0x68] sm:$0xff] }
 0x9fb   : > { %3949 = vmatprep.mubr.msk.f32.mxu1 %vm4522_vm1, %v4523_v48  ;;  %v4277_v60 = vpack.c.bf16 %v2038_v59, %v2037_v58 }
 0xac9   : > { %v1634_v2 = vpop.f32.mrb[12].mxu1 }
 0xaca   : > { %1809 = vrot.lane.b32.xlu1 %v1634_v2, %s5668_s3  ;;  %v3919_v3 = vpop.f32.mrb[13].mxu1  ;;  %s5709_s3 = smov 56  }
 0xacd   : > { %v1800_v4 = vpop.f32.mrb[14].mxu1 }
 0xace   : > { %1813 = vrot.lane.b32.xlu1 %v1800_v4, %s5667_s26  ;;  %v3929_v5 = vpop.f32.mrb[15].mxu1  ;;  %s5710_s26 = smov 72  }
 0xb3c   : > { %v1810_v7 = vpop.permute.xlu1 %1809 }
 0xb3d   : > { %v1818_v9 = vsel %vm1817_vm7, %v1816_v8, %v1810_v7 }
 0xb40   : > { %v1814_v10 = vpop.permute.xlu1 %1813 }
 0xb41   : > { %v1820_v11 = vsel %vm1819_vm8, %v1818_v9, %v1814_v10  ;;  %v3585_v10 = vld [vmem:[%s5632_s14] ss:$0 sm:$0xff] }
 0xb42   : > { %3939 = vmatmul.mubr.msk.f32.vlgmr.msra.gmra.mrb[8].mxu0 %vm1063_vm2, %v1820_v11 }
 0xb43   : > { %3984 = vmatprep.mubr.msk.f32.mxu0 %vm4522_vm1, %v4523_v48  ;;  %4260 = vmatpush3.bf16.msra.mxu0 %v4259_v31  ;;  %v3589_v31 = vld [vmem:[%s5698_s27 + $0x1] ss:$0 sm:$0xff] }
 0xb44   : > { %4261 = vmatprep.subr.bf16.mxu0 %v4521_v44 }
 0xb47   : > { %4263 = vmatpush3.bf16.msra.mxu0 %v4262_v33 }
 0xb48   : > { %4264 = vmatprep.subr.bf16.mxu0 %v4521_v44 }
 0xb4b   : > { %4266 = vmatpush3.bf16.msra.mxu0 %v4265_v37 }
 0xb4c   : > { %4267 = vmatprep.subr.bf16.mxu0 %v4521_v44 }
 0xb4f   : > { %4269 = vmatpush3.bf16.msra.mxu0 %v4268_v51 }
 0xb50   : > { %4270 = vmatprep.subr.bf16.mxu0 %v4521_v44 }
 0xb53   : > { %4272 = vmatpush3.bf16.msra.mxu0 %v4271_v54 }
 0xb54   : > { %4273 = vmatprep.subr.bf16.mxu0 %v4521_v44 }
 0xb57   : > { %4275 = vmatpush3.bf16.msra.mxu0 %v4274_v57 }
 0xb58   : > { %4276 = vmatprep.subr.bf16.mxu0 %v4521_v44 }
 0xb5b   : > { %4278 = vmatpush3.bf16.msra.mxu0 %v4277_v60 }
 0xb5c   : > { %4279 = vmatprep.subr.bf16.mxu0 %v4521_v44 }
 0xb5f   : > { %4281 = vmatpush3.bf16.msra.mxu0 %v4280_v63 }
 0xb60   : > { %4028 = vmatprep.subr.mxu0 %v4523_v48 }
 0xc15   : > { %v1894_v12 = vpop.f32.mrb[8].mxu0 }
 0xc16   : > { %v1898_v15 = vadd.f32 %v1894_v12, %v5016_v34  ;;  %v3940_v16 = vpop.f32.mrb[9].mxu0  ;;  %v1937_v34 = vld [vmem:[%s5629_s11 + $0x8] sm:$0xff] }
 0xc17   : > { %v4253_v24 = vpack.c.bf16 %v1937_v34, %v1936_v23  ;;  %v3592_v23 = vld [vmem:[%s5695_s28 + $0x30] sm:$0xff]  ;;  %v3593_v34 = vld [vmem:[%s5695_s28 + $0x38] sm:$0xff] }
 0xc18   : > { %v5157_v17 = vadd.f32 %v3580_v14, %v1898_v15 }
 0xc19   : > { %4254 = vmatpush3.bf16.msra.mxu1 %v4253_v24  ;;  %v4286_v24 = vpack.c.bf16 %v3593_v34, %v3592_v23 }
 0xc1a   : > { %v1909_v13 = vsel %vm1023_vm0, %v5157_v17, 0.0  ;;  %4255 = vmatprep.subr.bf16.mxu1 %v4521_v44 }
 0xc1b   : > { %1910 = vadd.xlane.f32.xlu1 %v1909_v13 }
 0xc1d   : > { %4257 = vmatpush3.bf16.msra.mxu1 %v4256_v27 }
 0xc1e   : > { %4282 = vmatprep.subr.bf16.mxu1 %v4521_v44 }
 0xca8   : > { %v1911_v18 = vpop.xlane.xlu1 %1910 }
 0xca9   : > { %v1912_v19 = vmul.f32 0.03125, %v1911_v18 }
 0xcab   : > { %v1913_v20 = vsub.f32 %v5157_v17, %v1912_v19 }
 0xcad   : > { %v1914_v21 = vmul.f32 %v1913_v20, %v1913_v20 }
 0xcaf   : > { %v1915_v22 = vsel %vm1023_vm0, %v1914_v21, 0.0  ;;  %v3590_v21 = vld [vmem:[%s5695_s28 + $0x20] sm:$0xff] }
 0xcb0   : > { %1916 = vadd.xlane.f32.xlu0 %v1915_v22 }
 0xd3d   : > { %v1917_v38 = vpop.xlane.xlu0 %1916 }
 0xd3e   : > { %v1918_v39 = vmul.f32 0.03125, %v1917_v38 }
 0xd40   : > { %v1919_v40 = vadd.f32 1e-06, %v1918_v39 }
 0xd42   : > { %4429 = vrsqrt.f32 %v1919_v40 }
 0xd4c   : > { %v4430_v41 = vpop.eup %4429 }
 0xd4d   : > { %v1921_v43 = vmul.f32 %v4430_v41, %v1913_v20 }
 0xd4f   : > { %v1928_v46 = vmul.f32 %v3581_v42, %v1921_v43 }
 0xd51   : > { %v1935_v47 = vadd.f32 %v3582_v45, %v1928_v46 }
 0xd53   : > { %3950 = vmatmul.mubr.msk.f32.vlgmr.msra.gmra.mrb[16].mxu1 %vm1063_vm2, %v1935_v47 }
 0xd54   : > { %3995 = vmatprep.mubr.msk.f32.mxu1 %vm4522_vm1, %v4523_v48 }
 0xe26   : > { %v2016_v1 = vpop.f32.mrb[16].mxu1 }
 0xe27   : > { %v2017_v2 = vadd.f32 %v3583_v0, %v2016_v1  ;;  %v3951_v3 = vpop.f32.mrb[17].mxu1 }
 0xe29   : > { %v2021_v4 = vmul.f32 0.70710677, %v2017_v2  ;;  %v2020_v6 = vmul.f32 0.5, %v2017_v2 }
 0xe2b   : > { %4431 = verf.f32 %v2021_v4 }
 0xe35   : > { %v4432_v5 = vpop.eup %4431 }
 0xe36   : > { %v2023_v7 = vadd.f32 1.0, %v4432_v5 }
 0xe38   : > { %v2024_v8 = vmul.f32 %v2023_v7, %v2020_v6 }
 0xe3a   : > { %3985 = vmatmul.mubr.f32.vlgmr.msra.gmra.mrb[10].mxu0 %v2024_v8 }
 0xe3b   : > { %4030 = vmatprep.mubr.msk.f32.mxu0 %vm4522_vm1, %v4523_v48 }
 0xf0d   : > { %v2107_v9 = vpop.f32.mrb[10].mxu0 }
 0xf0e   : > { %v2111_v11 = vadd.f32 %v2107_v9, %v5157_v17  ;;  %v3986_v12 = vpop.f32.mrb[11].mxu0  ;;  %v3591_v17 = vld [vmem:[%s5695_s28 + $0x28] sm:$0xff] }
 0xf0f   : > { %v4283_v22 = vpack.c.bf16 %v3591_v17, %v3590_v21 }
 0xf10   : > { %v5251_v14 = vadd.f32 %v3585_v10, %v2111_v11 }
 0xf11   : > { %4284 = vmatpush3.bf16.msra.mxu1 %v4283_v22 }
 0xf12   : > { %v2124_v15 = vsel %vm1023_vm0, %v5251_v14, 0.0  ;;  %4285 = vmatprep.subr.bf16.mxu1 %v4521_v44 }
 0xf13   : > { %2125 = vadd.xlane.f32.xlu0 %v2124_v15 }
 0xf15   : > { %4287 = vmatpush3.bf16.msra.mxu1 %v4286_v24 }
 0xf16   : > { %3998 = vmatprep.subr.mxu1 %v4523_v48 }
 0xfa0   : > { %v2126_v16 = vpop.xlane.xlu0 %2125 }
 0xfa1   : > { %v2127_v13 = vmul.f32 0.03125, %v2126_v16 }
 0xfa3   : > { %v2128_v18 = vsub.f32 %v5251_v14, %v2127_v13 }
 0xfa5   : > { %v2129_v19 = vmul.f32 %v2128_v18, %v2128_v18 }
 0xfa7   : > { %v2130_v20 = vsel %vm1023_vm0, %v2129_v19, 0.0 }
 0xfa8   : > { %2131 = vadd.xlane.f32.xlu1 %v2130_v20 }
0x1035   : > { %v2132_v25 = vpop.xlane.xlu1 %2131 }
0x1036   : > { %v2133_v26 = vmul.f32 0.03125, %v2132_v25 }
0x1038   : > { %v2134_v27 = vadd.f32 1e-06, %v2133_v26 }
0x103a   : > { %4433 = vrsqrt.f32 %v2134_v27 }
0x1044   : > { %v4434_v28 = vpop.eup %4433 }
0x1045   : > { %v2136_v30 = vmul.f32 %v4434_v28, %v2128_v18 }
0x1047   : > { %v2143_v32 = vmul.f32 %v3588_v29, %v2136_v30 }
0x1049   : > { %v2150_v33 = vadd.f32 %v3589_v31, %v2143_v32 }
0x104b   : > { %3996 = vmatmul.mubr.msk.f32.vlgmr.msra.gmra.mrb[18].mxu1 %vm1063_vm2, %v2150_v33 }
0x104c   : > { %4000 = vmatprep.mubr.msk.f32.mxu1 %vm4522_vm1, %v4523_v48 }
0x111e   : > { %v2233_v36 = vpop.f32.mrb[18].mxu1 }
0x111f   : > { %v5283_v37 = vadd.f32 %v3595_v35, %v2233_v36  ;;  %v3997_v38 = vpop.f32.mrb[19].mxu1 }
0x1120   : > { %v3614_v38 = vld [vmem:[%s5700_s22 + $0x28] sm:$0xff] }
0x1121   : > { %2238 = vrot.lane.b32.xlu0 %v5283_v37, %s5702_s23  ;;  %s5711_s23 = smov 48  }
0x1125   : > { %2404 = vrot.lane.b32.xlu0 %v5283_v37, %s5703_s6  ;;  %s5712_s6 = smov 8  }
0x1129   : > { %2402 = vrot.lane.b32.xlu0 %v5283_v37, %s5704_s4  ;;  %s5713_s4 = smov 40  }
0x1193   : > { %v2239_v39 = vpop.permute.xlu0 %2238 }
0x1194   : > { %3999 = vmatpush3.xpose.msk.msra.mxu1 %vm1140_vm3, %v2239_v39 }
0x1195   : > { %4003 = vmatprep.subr.mxu1 %v4523_v48 }
0x1197   : > { %4001 = vmatmul.mubr.msk.f32.vlgmr.msra.gmra.mrb[20].mxu1 %vm1140_vm3, %v5283_v37  ;;  %v2405_v53 = vpop.permute.xlu0 %2404 }
0x1198   : > { %4005 = vmatprep.mubr.msk.f32.mxu1 %vm4522_vm1, %v4523_v48 }
0x119b   : > { %v2403_v55 = vpop.permute.xlu0 %2402 }
0x126a   : > { %v2310_v40 = vpop.f32.mrb[20].mxu1 }
0x126b   : > { %v4002_v41 = vpop.f32.mrb[21].mxu1  ;;  %v2314_v42 = vsel %vm1215_vm5, %v2310_v40, -inf }
0x126c   : > { %2315 = vmax.xlane.f32.xlu1 %v2314_v42  ;;  %v3616_v41 = vld [vmem:[%s5700_s22 + $0x38] sm:$0xff] }
0x12f9   : > { %v2316_v43 = vpop.xlane.xlu1 %2315 }
0x12fa   : > { %v2317_v45 = vsub.f32 %v2310_v40, %v2316_v43  ;;  %v3615_v40 = vld [vmem:[%s5700_s22 + $0x30] sm:$0xff] }
0x12fb   : > { %v4292_v42 = vpack.c.bf16 %v3616_v41, %v3615_v40  ;;  %v3629_v41 = vld [vmem:[%s5630_s12 + $0x1] ss:$0 sm:$0xff] }
0x12fc   : > { %v2318_v46 = vmul.f32 1.442695, %v2317_v45 }
0x12fe   : > { %4435 = vpow2.f32 %v2318_v46 }
0x1308   : > { %v4436_v47 = vpop.eup %4435 }
0x1309   : > { %v2320_v49 = vsel %vm1215_vm5, %v4436_v47, 0.0 }
0x130a   : > { %2321 = vadd.xlane.f32.xlu1 %v2320_v49 }
0x131b   : > { %2325 = vrot.lane.b32.xlu1 %v5283_v37, %s5705_s25  ;;  %s5715_s25 = smov 24  }
0x1397   : > { %v2322_v50 = vpop.xlane.xlu1 %2321 }
0x1398   : > { %4437 = vrcp.f32 %v2322_v50 }
0x139b   : > { %v2326_v51 = vpop.permute.xlu1 %2325 }
0x139c   : > { %4004 = vmatpush3.msk.msra.mxu1 %vm1233_vm4, %v2326_v51 }
0x139d   : > { %4008 = vmatprep.subr.mxu1 %v4523_v48 }
0x13a2   : > { %v4438_v52 = vpop.eup %4437 }
0x13a3   : > { %v2324_v54 = vmul.f32 %v4438_v52, %v4436_v47 }
0x13a5   : > { %4006 = vmatmul.mubr.msk.f32.vlgmr.msra.gmra.mrb[22].mxu1 %vm1229_vm6, %v2324_v54 }
0x13a6   : > { %4009 = vmatpush3.xpose.msk.msra.mxu1 %vm1140_vm3, %v2405_v53  ;;  %4010 = vmatprep.mubr.msk.f32.mxu1 %vm4522_vm1, %v4523_v48 }
0x13a7   : > { %4013 = vmatprep.subr.mxu1 %v4523_v48 }
0x13a9   : > { %4011 = vmatmul.mubr.msk.f32.vlgmr.msra.gmra.mrb[24].mxu1 %vm1140_vm3, %v2403_v55 }
0x13aa   : > { %4015 = vmatprep.mubr.msk.f32.mxu1 %vm4522_vm1, %v4523_v48 }
0x1478   : > { %v5311_v56 = vpop.f32.mrb[22].mxu1 }
0x1479   : > { %v4007_v57 = vpop.f32.mrb[23].mxu1 }
0x147a   : > { %v3619_v57 = vld [vmem:[%s5701_s8 + $0x1] ss:$0 sm:$0xff] }
0x147c   : > { %v2476_v58 = vpop.f32.mrb[24].mxu1 }
0x147d   : > { %v4012_v59 = vpop.f32.mrb[25].mxu1  ;;  %v2480_v60 = vsel %vm1215_vm5, %v2476_v58, -inf }
0x147e   : > { %2481 = vmax.xlane.f32.xlu1 %v2480_v60 }
0x148f   : > { %2570 = vrot.lane.b32.xlu1 %v5283_v37, %s5706_s29 }
0x1493   : > { %2568 = vrot.lane.b32.xlu1 %v5283_v37, %s5707_s0 }
0x1497   : > { %2734 = vrot.lane.b32.xlu1 %v5283_v37, %s5708_s24 }
0x150b   : > { %v2482_v61 = vpop.xlane.xlu1 %2481 }
0x150c   : > { %v2483_v62 = vsub.f32 %v2476_v58, %v2482_v61 }
0x150e   : > { %v2484_v63 = vmul.f32 1.442695, %v2483_v62 }
0x150f   : > { %v2571_v2 = vpop.permute.xlu1 %2570 }
0x1510   : > { %4439 = vpow2.f32 %v2484_v63 }
0x1513   : > { %v2569_v5 = vpop.permute.xlu1 %2568 }
0x1517   : > { %v2735_v8 = vpop.permute.xlu1 %2734 }
0x151a   : > { %v4440_v0 = vpop.eup %4439 }
0x151b   : > { %v2486_v1 = vsel %vm1215_vm5, %v4440_v0, 0.0 }
0x151c   : > { %2487 = vadd.xlane.f32.xlu0 %v2486_v1 }
0x1532   : > { %2491 = vrot.lane.b32.xlu0 %v5283_v37, %s5709_s3  ;;  %s5717_s3 = sld [smem:[#allocation21_spill]] }
0x1536   : > { %2736 = vrot.lane.b32.xlu0 %v5283_v37, %s5710_s26  ;;  %s701_s26 = sand.u32 1, %s4511_s30  }
0x1537   : > { %s702_s1 = scalar_lea.vmem [#allocation2], %s701_s26 }
0x1538   : > { %s3499_s29 = sshll.u32 %s702_s1, 4  ;;  %s5577_s29 = int_to_ptr.vmem [resolvable:$true] %s3499_s29 }
0x15a9   : > { %v2488_v3 = vpop.xlane.xlu0 %2487 }
0x15aa   : > { %4441 = vrcp.f32 %v2488_v3 }
0x15ad   : > { %v2492_v4 = vpop.permute.xlu0 %2491 }
0x15ae   : > { %4014 = vmatpush3.msk.msra.mxu1 %vm1233_vm4, %v2492_v4  ;;  %v3626_v4 = vld [vmem:[%s5629_s11 + $0x30] sm:$0xff] }
0x15af   : > { %4018 = vmatprep.subr.mxu1 %v4523_v48 }
0x15b1   : > { %v2737_v6 = vpop.permute.xlu0 %2736 }
0x15b2   : > { %4029 = vmatpush3.xpose.msk.msra.mxu0 %vm1140_vm3, %v2737_v6 }
0x15b3   : > { %4288 = vmatprep.subr.bf16.mxu0 %v4521_v44 }
0x15b4   : > { %v4442_v7 = vpop.eup %4441 }
0x15b5   : > { %v2490_v9 = vmul.f32 %v4442_v7, %v4440_v0  ;;  %4031 = vmatmul.mubr.msk.f32.vlgmr.msra.gmra.mrb[12].mxu0 %vm1140_vm3, %v2735_v8  ;;  %v3631_v7 = vld [vmem:[%s5631_s13 + $0x80] sm:$0xff]  ;;  %v3632_v8 = vld [vmem:[%s5631_s13 + $0x88] sm:$0xff] }
0x15b6   : > { %4046 = vmatprep.mubr.msk.f32.mxu0 %vm4522_vm1, %v4523_v48 }
0x15b7   : > { %4016 = vmatmul.mubr.msk.f32.vlgmr.msra.gmra.mrb[26].mxu1 %vm1229_vm6, %v2490_v9  ;;  %v3633_v9 = vld [vmem:[%s5631_s13 + $0x90] sm:$0xff] }
0x15b8   : > { %4019 = vmatpush3.xpose.msk.msra.mxu1 %vm1140_vm3, %v2571_v2  ;;  %4020 = vmatprep.mubr.msk.f32.mxu1 %vm4522_vm1, %v4523_v48  ;;  %v3624_v2 = vld [vmem:[%s5629_s11 + $0x20] sm:$0xff] }
0x15b9   : > { %4023 = vmatprep.subr.mxu1 %v4523_v48 }
0x15bb   : > { %4021 = vmatmul.mubr.msk.f32.vlgmr.msra.gmra.mrb[28].mxu1 %vm1140_vm3, %v2569_v5  ;;  %v3627_v5 = vld [vmem:[%s5629_s11 + $0x38] sm:$0xff] }
0x15bc   : > { %4025 = vmatprep.mubr.msk.f32.mxu1 %vm4522_vm1, %v4523_v48  ;;  %v4298_v6 = vpack.c.bf16 %v3627_v5, %v3626_v4 }
0x1688   : > { %v2808_v10 = vpop.f32.mrb[12].mxu0 }
0x1689   : > { %v4032_v11 = vpop.f32.mrb[13].mxu0  ;;  %v2812_v12 = vsel %vm1215_vm5, %v2808_v10, -inf }
0x168a   : > { %2813 = vmax.xlane.f32.xlu1 %v2812_v12  ;;  %v2564_v15 = vpop.f32.mrb[26].mxu1  ;;  %v3634_v11 = vld [vmem:[%s5631_s13 + $0x98] sm:$0xff] }
0x168b   : > { %v4017_v16 = vpop.f32.mrb[27].mxu1  ;;  %v4304_v12 = vpack.c.bf16 %v3634_v11, %v3633_v9  ;;  %v3320_v11 = vld [vmem:[%s5637_s19 + $0x8] sm:$0xff] }
0x168c   : > { %v3636_v16 = vld [vmem:[%s5631_s13 + $0xa8] sm:$0xff] }
0x168e   : > { %v2642_v13 = vpop.f32.mrb[28].mxu1 }
0x168f   : > { %v4022_v18 = vpop.f32.mrb[29].mxu1  ;;  %v2646_v19 = vsel %vm1215_vm5, %v2642_v13, -inf }
0x1690   : > { %2647 = vmax.xlane.f32.xlu0 %v2646_v19 }
0x169b   : > { %2657 = vrot.lane.b32.xlu1 %v5283_v37, %s5711_s23  ;;  %s3487_s23 = scalar_lea.sflag [#allocation3], %s701_s26 }
0x169f   : > { %2901 = vrot.lane.b32.xlu1 %v2564_v15, %s5712_s6  ;;  %v3635_v15 = vld [vmem:[%s5631_s13 + $0xa0] sm:$0xff]  ;;  %s4457_s6 = scalar_lea.vmem %s5577_s29, 16 }
0x16a0   : > { %p4458_p11 = scmp.ne.s32.totalorder %s5577_s29, %s4457_s6 }
0x16a2   : > { %p4459_p12 = pnand %p4458_p11, %p4697_p5 }
0x16a4   : > { %p4460_p13 = pneg %p4459_p12 }
0x1717   : > { %v2814_v20 = vpop.xlane.xlu1 %2813 }
0x1718   : > { %v2815_v21 = vsub.f32 %v2808_v10, %v2814_v20  ;;  %v4301_v10 = vpack.c.bf16 %v3632_v8, %v3631_v7  ;;  %v3222_v8 = vld [vmem:[%s5633_s15] sm:$0x1] }
0x171a   : > { %v2816_v17 = vmul.f32 1.442695, %v2815_v21 }
0x171b   : > { %v2658_v22 = vpop.permute.xlu1 %2657 }
0x171c   : > { %4443 = vpow2.f32 %v2816_v17  ;;  %4024 = vmatpush3.msk.msra.mxu1 %vm1233_vm4, %v2658_v22  ;;  %v3622_v17 = vld [vmem:[%s5627_s9 + $0x1] ss:$0 sm:$0xff] }
0x171d   : > { %v2648_v23 = vpop.xlane.xlu0 %2647  ;;  %4033 = vmatprep.subr.mxu1 %v4523_v48 }
0x171e   : > { %v2649_v34 = vsub.f32 %v2642_v13, %v2648_v23  ;;  %v4307_v13 = vpack.c.bf16 %v3636_v16, %v3635_v15  ;;  %v3623_v23 = vld [vmem:[%s5628_s10 + $0x1] ss:$0 sm:$0xff] }
0x171f   : > { %v2902_v49 = vpop.permute.xlu1 %2901 }
0x1720   : > { %v2650_v24 = vmul.f32 1.442695, %v2649_v34  ;;  %v2912_v51 = vsel %vm1140_vm3, %v5311_v56, %v2902_v49 }
0x1722   : > { %4445 = vpow2.f32 %v2650_v24 }
0x1726   : > { %v4444_v25 = vpop.eup %4443 }
0x1727   : > { %v2818_v26 = vsel %vm1215_vm5, %v4444_v25, 0.0 }
0x1728   : > { %2819 = vadd.xlane.f32.xlu0 %v2818_v26  ;;  %v3638_v26 = vld [vmem:[%s5631_s13 + $0xb8] sm:$0xff] }
0x172c   : > { %v4446_v27 = vpop.eup %4445 }
0x172d   : > { %v2652_v28 = vsel %vm1215_vm5, %v4446_v27, 0.0 }
0x172e   : > { %2653 = vadd.xlane.f32.xlu0 %v2652_v28  ;;  %v3639_v28 = vld [vmem:[%s5631_s13 + $0xc0] sm:$0xff] }
0x1744   : > { %2823 = vrot.lane.b32.xlu0 %v5283_v37, %s5713_s4  ;;  %v3613_v37 = vld [vmem:[%s5700_s22 + $0x20] sm:$0xff]  ;;  %s5714_s4 = smov 16  }
0x1745   : > { %v4289_v39 = vpack.c.bf16 %v3614_v38, %v3613_v37  ;;  %v3645_v38 = vld [vmem:[%s5631_s13 + $0xf0] sm:$0xff] }
0x1747   : > { %4290 = vmatpush3.bf16.msra.mxu0 %v4289_v39  ;;  %v3646_v39 = vld [vmem:[%s5631_s13 + $0xf8] sm:$0xff] }
0x1748   : > { %4291 = vmatprep.subr.bf16.mxu0 %v4521_v44  ;;  %v4322_v40 = vpack.c.bf16 %v3646_v39, %v3645_v38  ;;  %v3408_v38 = vld [vmem:[%s5639_s21 + $0x28] sm:$0xff] }
0x174b   : > { %4293 = vmatpush3.bf16.msra.mxu0 %v4292_v42 }
0x174c   : > { %4300 = vmatprep.subr.bf16.mxu0 %v4521_v44 }
0x17b5   : > { %v2820_v29 = vpop.xlane.xlu0 %2819 }
0x17bb   : > { %v2654_v30 = vpop.xlane.xlu0 %2653 }
0x17bc   : > { %4447 = vrcp.f32 %v2654_v30 }
0x17bd   : > { %4449 = vrcp.f32 %v2820_v29  ;;  %v3640_v29 = vld [vmem:[%s5631_s13 + $0xc8] sm:$0xff] }
0x17be   : > { %v4313_v30 = vpack.c.bf16 %v3640_v29, %v3639_v28 }
0x17bf   : > { %v2824_v35 = vpop.permute.xlu0 %2823 }
0x17c6   : > { %v4448_v31 = vpop.eup %4447 }
0x17c7   : > { %v2656_v32 = vmul.f32 %v4448_v31, %v4446_v27  ;;  %v4450_v33 = vpop.eup %4449  ;;  %v3641_v31 = vld [vmem:[%s5631_s13 + $0xd0] sm:$0xff] }
0x17c8   : > { %v2822_v36 = vmul.f32 %v4450_v33, %v4444_v25  ;;  %v3637_v25 = vld [vmem:[%s5631_s13 + $0xb0] sm:$0xff] }
0x17c9   : > { %4026 = vmatmul.mubr.msk.f32.vlgmr.msra.gmra.mrb[30].mxu1 %vm1229_vm6, %v2656_v32  ;;  %v4310_v27 = vpack.c.bf16 %v3638_v26, %v3637_v25  ;;  %v3642_v32 = vld [vmem:[%s5631_s13 + $0xd8] sm:$0xff]  ;;  %v3244_v25 = vld [vmem:[%s5636_s18] sm:$0x1] }
0x17ca   : > { %4034 = vmatpush3.msk.msra.mxu1 %vm1233_vm4, %v2824_v35  ;;  %4035 = vmatprep.mubr.msk.f32.mxu1 %vm4522_vm1, %v4523_v48  ;;  %v4316_v33 = vpack.c.bf16 %v3642_v32, %v3641_v31  ;;  %v3643_v35 = vld [vmem:[%s5631_s13 + $0xe0] sm:$0xff] }
0x17cb   : > { %4294 = vmatprep.subr.bf16.mxu1 %v4521_v44  ;;  %v3403_v26 = vld [vmem:[%s5639_s21] sm:$0xff] }
0x17cd   : > { %4036 = vmatmul.mubr.msk.f32.vlgmr.msra.gmra.mrb[32].mxu1 %vm1229_vm6, %v2822_v36  ;;  %v3644_v36 = vld [vmem:[%s5631_s13 + $0xe8] sm:$0xff] }
0x17ce   : > { %4057 = vmatprep.mubr.msk.f32.mxu1 %vm4522_vm1, %v4523_v48  ;;  %v4319_v37 = vpack.c.bf16 %v3644_v36, %v3643_v35  ;;  %v3406_v35 = vld [vmem:[%s5639_s21 + $0x18] sm:$0xff] }
0x189c   : > { %v2730_v43 = vpop.f32.mrb[30].mxu1 }
0x189d   : > { %2905 = vrot.lane.b32.xlu1 %v2730_v43, %s5714_s4  ;;  %v4027_v45 = vpop.f32.mrb[31].mxu1  ;;  %s5716_s4 = sld [smem:[#allocation20_spill]] }
0x18a0   : > { %v2896_v46 = vpop.f32.mrb[32].mxu1 }
0x18a1   : > { %2909 = vrot.lane.b32.xlu0 %v2896_v46, %s5715_s25  ;;  %v4037_v47 = vpop.f32.mrb[33].mxu1  ;;  %s3652_s25 = sshll.u32 %s4680_s5, 4  ;;  %s4538_s5 = smov [#allocation2]  }
0x18a2   : > { %s5575_s2 = scalar_lea.hbm %s5717_s3, %s3652_s25 }
0x190f   : > { %v2906_v50 = vpop.permute.xlu1 %2905 }
0x1910   : > { %v2913_v52 = vsel %vm1817_vm7, %v2912_v51, %v2906_v50 }
0x1913   : > { %v2910_v53 = vpop.permute.xlu0 %2909 }
0x1914   : > { %v2914_v54 = vsel %vm1819_vm8, %v2913_v52, %v2910_v53  ;;  %v3648_v53 = vld [vmem:[%s5632_s14 + $0x1] ss:$0 sm:$0xff] }
0x1915   : > { %4047 = vmatmul.mubr.msk.f32.vlgmr.msra.gmra.mrb[14].mxu0 %vm1063_vm2, %v2914_v54 }
0x1916   : > { %4092 = vmatprep.mubr.msk.f32.mxu0 %vm4522_vm1, %v4523_v48  ;;  %4302 = vmatpush3.bf16.msra.mxu0 %v4301_v10  ;;  %v3319_v10 = vld [vmem:[%s5637_s19] sm:$0xff] }
0x1917   : > { %4303 = vmatprep.subr.bf16.mxu0 %v4521_v44  ;;  %v4331_v16 = vpack.c.bf16 %v3320_v11, %v3319_v10 }
0x191a   : > { %4305 = vmatpush3.bf16.msra.mxu0 %v4304_v12  ;;  %v3223_v12 = vld [vmem:[%s5634_s16] sm:$0x1] }
0x191b   : > { %4306 = vmatprep.subr.bf16.mxu0 %v4521_v44 }
0x191e   : > { %4308 = vmatpush3.bf16.msra.mxu0 %v4307_v13 }
0x191f   : > { %4309 = vmatprep.subr.bf16.mxu0 %v4521_v44 }
0x1922   : > { %4311 = vmatpush3.bf16.msra.mxu0 %v4310_v27  ;;  %v3404_v27 = vld [vmem:[%s5639_s21 + $0x8] sm:$0xff] }
0x1923   : > { %4312 = vmatprep.subr.bf16.mxu0 %v4521_v44  ;;  %v4343_v31 = vpack.c.bf16 %v3404_v27, %v3403_v26 }
0x1926   : > { %4314 = vmatpush3.bf16.msra.mxu0 %v4313_v30 }
0x1927   : > { %4315 = vmatprep.subr.bf16.mxu0 %v4521_v44 }
0x192a   : > { %4317 = vmatpush3.bf16.msra.mxu0 %v4316_v33  ;;  %v3405_v33 = vld [vmem:[%s5639_s21 + $0x10] sm:$0xff] }
0x192b   : > { %4318 = vmatprep.subr.bf16.mxu0 %v4521_v44  ;;  %v4346_v36 = vpack.c.bf16 %v3406_v35, %v3405_v33 }
0x192e   : > { %4320 = vmatpush3.bf16.msra.mxu0 %v4319_v37  ;;  %v3407_v37 = vld [vmem:[%s5639_s21 + $0x20] sm:$0xff] }
0x192f   : > { %4321 = vmatprep.subr.bf16.mxu0 %v4521_v44  ;;  %v4349_v39 = vpack.c.bf16 %v3408_v38, %v3407_v37 }
0x1932   : > { %4323 = vmatpush3.bf16.msra.mxu0 %v4322_v40  ;;  %v3410_v40 = vld [vmem:[%s5639_s21 + $0x38] sm:$0xff] }
0x19e8   : > { %v2989_v55 = vpop.f32.mrb[14].mxu0 }
0x19e9   : > { %v2993_v58 = vadd.f32 %v2989_v55, %v5251_v14  ;;  %v4048_v59 = vpop.f32.mrb[15].mxu0  ;;  %v3625_v14 = vld [vmem:[%s5629_s11 + $0x28] sm:$0xff] }
0x19ea   : > { %v4295_v3 = vpack.c.bf16 %v3625_v14, %v3624_v2  ;;  %v3242_v2 = vld [vmem:[%s5635_s17 + $0x10] sm:$0xff]  ;;  %v3243_v14 = vld [vmem:[%s5635_s17 + $0x18] sm:$0xff] }
0x19eb   : > { %v5386_v60 = vadd.f32 %v3619_v57, %v2993_v58 }
0x19ec   : > { %4296 = vmatpush3.bf16.msra.mxu1 %v4295_v3  ;;  %v4328_v3 = vpack.c.bf16 %v3243_v14, %v3242_v2 }
0x19ed   : > { %v3007_v56 = vsel %vm1023_vm0, %v5386_v60, 0.0  ;;  %4297 = vmatprep.subr.bf16.mxu1 %v4521_v44 }
0x19ee   : > { %3008 = vadd.xlane.f32.xlu1 %v3007_v56 }
0x19f0   : > { %4299 = vmatpush3.bf16.msra.mxu1 %v4298_v6 }
0x19f1   : > { %4324 = vmatprep.subr.bf16.mxu1 %v4521_v44 }
0x1a7b   : > { %v3009_v61 = vpop.xlane.xlu1 %3008 }
0x1a7c   : > { %v3010_v62 = vmul.f32 0.03125, %v3009_v61 }
0x1a7e   : > { %v3011_v63 = vsub.f32 %v5386_v60, %v3010_v62 }
0x1a80   : > { %v3012_v0 = vmul.f32 %v3011_v63, %v3011_v63 }
0x1a82   : > { %v3013_v1 = vsel %vm1023_vm0, %v3012_v0, 0.0  ;;  %v3240_v0 = vld [vmem:[%s5635_s17] sm:$0xff] }
0x1a83   : > { %3014 = vadd.xlane.f32.xlu0 %v3013_v1 }
0x1b10   : > { %v3015_v18 = vpop.xlane.xlu0 %3014 }
0x1b11   : > { %v3016_v19 = vmul.f32 0.03125, %v3015_v18  ;;  %v3321_v18 = vld [vmem:[%s5637_s19 + $0x10] sm:$0xff] }
0x1b13   : > { %v3017_v20 = vadd.f32 1e-06, %v3016_v19  ;;  %v3322_v19 = vld [vmem:[%s5637_s19 + $0x18] sm:$0xff] }
0x1b15   : > { %4451 = vrsqrt.f32 %v3017_v20  ;;  %v4334_v20 = vpack.c.bf16 %v3322_v19, %v3321_v18 }
0x1b1f   : > { %v4452_v21 = vpop.eup %4451 }
0x1b20   : > { %v3019_v22 = vmul.f32 %v4452_v21, %v3011_v63  ;;  %v3323_v21 = vld [vmem:[%s5637_s19 + $0x20] sm:$0xff] }
0x1b22   : > { %v3026_v34 = vmul.f32 %v3622_v17, %v3019_v22  ;;  %v3324_v17 = vld [vmem:[%s5637_s19 + $0x28] sm:$0xff] }
0x1b23   : > { %v4337_v22 = vpack.c.bf16 %v3324_v17, %v3323_v21 }
0x1b24   : > { %v3033_v24 = vadd.f32 %v3623_v23, %v3026_v34  ;;  %v3325_v23 = vld [vmem:[%s5637_s19 + $0x30] sm:$0xff]  ;;  %v3326_v34 = vld [vmem:[%s5637_s19 + $0x38] sm:$0xff] }
0x1b26   : > { %4058 = vmatmul.mubr.msk.f32.vlgmr.msra.gmra.mrb[34].mxu1 %vm1063_vm2, %v3033_v24  ;;  %v4340_v24 = vpack.c.bf16 %v3326_v34, %v3325_v23 }
0x1b27   : > { %4103 = vmatprep.mubr.msk.f32.mxu1 %vm4522_vm1, %v4523_v48 }
0x1bf9   : > { %v3116_v42 = vpop.f32.mrb[34].mxu1 }
0x1bfa   : > { %v3117_v43 = vadd.f32 %v3629_v41, %v3116_v42  ;;  %v4059_v45 = vpop.f32.mrb[35].mxu1  ;;  %v3327_v42 = vld [vmem:[%s5638_s20] sm:$0x1] }
0x1bfc   : > { %v3121_v46 = vmul.f32 0.70710677, %v3117_v43  ;;  %v3120_v49 = vmul.f32 0.5, %v3117_v43 }
0x1bfe   : > { %4453 = verf.f32 %v3121_v46 }
0x1c08   : > { %v4454_v47 = vpop.eup %4453 }
0x1c09   : > { %v3123_v50 = vadd.f32 1.0, %v4454_v47 }
0x1c0b   : > { %v3124_v51 = vmul.f32 %v3123_v50, %v3120_v49 }
0x1c0d   : > { %4093 = vmatmul.mubr.f32.vlgmr.msra.gmra.mrb[16].mxu0 %v3124_v51 }
0x1ce0   : > { %v3208_v52 = vpop.f32.mrb[16].mxu0 }
0x1ce1   : > { %v3212_v54 = vadd.f32 %v3208_v52, %v5386_v60  ;;  %v4094_v55 = vpop.f32.mrb[17].mxu0  ;;  %v3241_v60 = vld [vmem:[%s5635_s17 + $0x8] sm:$0xff] }
0x1ce2   : > { %v4325_v1 = vpack.c.bf16 %v3241_v60, %v3240_v0 }
0x1ce3   : > { %v3221_v57 = vadd.f32 %v3648_v53, %v3212_v54 }
0x1ce4   : > { %4326 = vmatpush3.bf16.msra.mxu1 %v4325_v1 }
0x1ce5   : > { %v3225_v58 = vsel %vm3224_vm9, %v3221_v57, 0.0  ;;  %4327 = vmatprep.subr.bf16.mxu1 %v4521_v44 }
0x1ce6   : > { %3226 = vadd.xlane.f32.xlu0 %v3225_v58 }
0x1ce8   : > { %4329 = vmatpush3.bf16.msra.mxu1 %v4328_v3 }
0x1ce9   : > { %4330 = vmatprep.subr.bf16.mxu1 %v4521_v44 }
0x1d73   : > { %v3227_v59 = vpop.xlane.xlu0 %3226 }
0x1d74   : > { %v3228_v56 = vmul.f32 0.03125, %v3227_v59 }
0x1d76   : > { %v3229_v61 = vsub.f32 %v3221_v57, %v3228_v56 }
0x1d78   : > { %v3230_v62 = vmul.f32 %v3229_v61, %v3229_v61 }
0x1d7a   : > { %v3231_v63 = vsel %vm3224_vm9, %v3230_v62, 0.0 }
0x1d7b   : > { %3232 = vadd.xlane.f32.xlu1 %v3231_v63 }
0x1e08   : > { %v3233_v4 = vpop.xlane.xlu1 %3232 }
0x1e09   : > { %v3234_v5 = vmul.f32 0.03125, %v3233_v4 }
0x1e0b   : > { %v3235_v6 = vadd.f32 1e-06, %v3234_v5 }
0x1e0d   : > { %4455 = vrsqrt.f32 %v3235_v6 }
0x1e17   : > { %v4456_v7 = vpop.eup %4455 }
0x1e18   : > { %v3237_v9 = vmul.f32 %v4456_v7, %v3229_v61 }
0x1e1a   : > { %v3238_v15 = vmul.f32 %v3237_v9, %v3222_v8 }
0x1e1c   : > { %v3239_v13 = vadd.f32 %v3238_v15, %v3223_v12 }
0x1e1e   : > { %4104 = vmatmul.mubr.msk.f32.vlgmr.msra.gmra.mrb[36].mxu1 %vm1063_vm2, %v3239_v13 }
0x1e1f   : > { %4332 = vmatpush3.bf16.msra.mxu1 %v4331_v16  ;;  %4122 = vmatprep.mubr.msk.f32.mxu1 %vm4522_vm1, %v4523_v48 }
0x1e20   : > { %4333 = vmatprep.subr.bf16.mxu1 %v4521_v44 }
0x1e23   : > { %4335 = vmatpush3.bf16.msra.mxu1 %v4334_v20 }
0x1e24   : > { %4336 = vmatprep.subr.bf16.mxu1 %v4521_v44 }
0x1e27   : > { %4338 = vmatpush3.bf16.msra.mxu1 %v4337_v22 }
0x1e28   : > { %4339 = vmatprep.subr.bf16.mxu1 %v4521_v44 }
0x1e2b   : > { %4341 = vmatpush3.bf16.msra.mxu1 %v4340_v24 }
0x1e2c   : > { %4342 = vmatprep.subr.bf16.mxu1 %v4521_v44 }
0x1ef1   : > { %v3314_v28 = vpop.f32.mrb[36].mxu1 }
0x1ef2   : > { %v3315_v29 = vadd.f32 %v3314_v28, %v3244_v25  ;;  %v4105_v30 = vpop.f32.mrb[37].mxu1 }
0x1ef4   : > { %v3318_v32 = vmax.f32 %v3315_v29, 0.0 }
0x1ef6   : > { %4123 = vmatmul.mubr.msk.f32.vlgmr.msra.gmra.mrb[38].mxu1 %vm3328_vm10, %v3318_v32 }
0x1ef7   : > { %4344 = vmatpush3.bf16.msra.mxu1 %v4343_v31  ;;  %4141 = vmatprep.mubr.msk.f32.mxu1 %vm4522_vm1, %v4523_v48  ;;  %v3409_v48 = vld [vmem:[%s5639_s21 + $0x30] sm:$0xff] }
0x1ef8   : > { %4345 = vmatprep.subr.bf16.mxu1 %v4521_v44  ;;  %v4352_v41 = vpack.c.bf16 %v3410_v40, %v3409_v48 }
0x1efb   : > { %4347 = vmatpush3.bf16.msra.mxu1 %v4346_v36 }
0x1efc   : > { %4348 = vmatprep.subr.bf16.mxu1 %v4521_v44 }
0x1eff   : > { %4350 = vmatpush3.bf16.msra.mxu1 %v4349_v39 }
0x1f00   : > { %4351 = vmatprep.subr.bf16.mxu1 %v4521_v44  ;;  %v3411_v44 = vld [vmem:[%s5716_s4] sm:$0x1]  ;;  %s4461_s4 = sshll.u32 %s4538_s5, 4  ;;  %s4462_s4 = int_to_ptr.vmem [resolvable:$false] %s4461_s4 }
0x1f01   : > { %s4463_s8 = scalar_lea.vmem %s4462_s4, 32  ;;  %p4464_p0 = scmp.lt.s32.totalorder %s5577_s29, %s4462_s4 }
0x1f02   : > { %p4465_p1 = scmp.lt.s32.totalorder %s4463_s8, %s4457_s6 }
0x1f03   : > { %4353 = vmatpush3.bf16.msra.mxu1 %v4352_v41 }
0x1f04   : > { %p4466_p2 = por %p4465_p1, %p4464_p0 }
0x1f06   : > { %p4467_p3 = pnand %p4466_p2, %p4460_p13 }
0x1fc9   : > { %v3398_v43 = vpop.f32.mrb[38].mxu1 }
0x1fca   : > { %v3399_v45 = vadd.f32 %v3398_v43, %v3327_v42  ;;  %v4124_v46 = vpop.f32.mrb[39].mxu1 }
0x1fcc   : > { %v3402_v47 = vmax.f32 %v3399_v45, 0.0 }
0x1fce   : > { %4142 = vmatmul.mubr.msk.f32.vlgmr.msra.gmra.mrb[40].mxu1 %vm3328_vm10, %v3402_v47 }
0x20a1   : > { %v3481_v49 = vpop.f32.mrb[40].mxu1 }
0x20a2   : > { %v3482_v50 = vadd.f32 %v3481_v49, %v3411_v44  ;;  %v4143_v51 = vpop.f32.mrb[41].mxu1 }
0x20a4   : > { %3485 = vst.msk [vmem:[%s702_s1] sm:$0x1] %vm3224_vm9, %v3482_v50 }
0x20a5   : > { %4470 = shalt.err (!%p4467_p3)
}
0x20a6   : > { %s4471_s26 = scalar_lea.hbm %s5575_s2, 16  ;;  %s4475_s0 = scalar_lea.hbm %s5717_s3, 32 }
0x20a7   : > { %p4472_p4 = scmp.ne.s32.totalorder %s5575_s2, %s4471_s26  ;;  %p4476_p9 = scmp.lt.u32.totalorder %s5575_s2, %s5717_s3 }
0x20a8   : > { %p4477_p10 = scmp.lt.u32.totalorder %s4475_s0, %s4471_s26  ;;  %p4479_p12 = scmp.lt.u32.totalorder %s4471_s26, %s5575_s2 }
0x20a9   : > { %p4473_p7 = pnand %p4472_p4, %p4697_p5 }
0x20aa   : > { %p4478_p11 = por %p4477_p10, %p4476_p9 }
0x20ab   : > { %p4474_p8 = pneg %p4473_p7 }
0x20ac   : > { %p4480_p13 = por %p4479_p12, %p4478_p11 }
0x20ae   : > { %p4481_p0 = pnand %p4480_p13, %p4474_p8 }
0x20b0   : > { %4484 = shalt.err (!%p4481_p0)
}
0x20b1   : > { %4355 = dma.vmem_to_hbm [thread:$0]  (%p4697_p5), %s5577_s29, 16, %s5575_s2, %s3487_s23  }
0x20b2 PF: > { %s5718_s8 = sld [smem:[#allocation7_spill]]  ;;  %s5719_s6 = sld [smem:[#allocation5_spill]] }
0x20b8   : > { %p4361_p1 = scmp.ge.s32.totalorder %s5718_s8, 2  ;;  %s3511_s25 = sand.u32 1, %s5719_s6  }
0x20b9   : > { %s3512_s1 = scalar_lea.sflag [#allocation3], %s3511_s25 }
0x20ba   : > { %p4358_p2 = pnand %p4361_p1, %p4701_p6 }
0x20bc   : > { %4502 = dma.done.wait (!%p4358_p2), %s3512_s1, 16  }
0x20bd   : > { %4504 = vsyncadd (!%p4358_p2), %s3512_s1, 4294967280  ;;  %s5721_s25 = sld [smem:[#allocation8_spill]]  ;;  %s5722_s26 = sld [smem:[#allocation6_spill]] }
0x20be   : > { %s5723_s24 = sld [smem:[#allocation9_spill]]  ;;  %s5724_s4 = smov %s4511_s30 }
0x20c3   : > { %p33_p3 = scmp.ge.s32.totalorder %s5721_s25, 4   ;;  %s5725_s30 = smov %s5722_s26 }
0x20c5   :  { %35 = sbr.rel (!%p33_p3) target bundleno = 15 (0xf), region = 159 }
0x20cc   :  { %3516 = vsyncpa [#allocation3], 1 }
0x20cd   :  { %3518 = vsyncpa [#allocation3 + $0x1], 1 }

</bundles_post_ra>
